<compile_context>
chip_gen: v5e
topology: v5e:2x2
jax: 0.10.0
libtpu: 0.0.40
codegen_flags: <defaults>
</compile_context>

<pallas_src>
import math

import jax
import jax.numpy as jnp
from jax.experimental import pallas as pl
from jax.experimental.pallas import tpu as pltpu

NUM_HEADS = 6     # MultiHeadSelfAttention default num_heads
LN_EPS = 1e-5
BN_EPS = 1e-5
OUT_LANES = 128   # lane-dense output block; the real 2 logits live in lanes [0, 2)


def _round_up(x, m):
    return ((x + m - 1) // m) * m


def _trimodal_cmd_kernel(
    t_ref, v_ref, a_ref,
    wp_t_ref, bp_t_ref, wp_v_ref, bp_v_ref, wp_a_ref, bp_a_ref,
    ln_g_ref, ln_b_ref,
    w_sh_ref, b_sh_ref,
    w_q_ref, w_k_ref, w_v_ref,
    hmask_ref, hmask_t_ref,
    w_eff_t_ref, w_eff_v_ref, w_eff_a_ref, b_eff_ref,
    o_ref,
):
    f32 = jnp.float32
    bf16 = jnp.bfloat16
    TB = t_ref.shape[0]
    D = w_sh_ref.shape[0]
    nh = hmask_ref.shape[1]
    dk = D // nh
    norm_fact = 1.0 / math.sqrt(dk)

    ln_g = ln_g_ref[...]
    ln_b = ln_b_ref[...]

    def layernorm(x):
        mu = jnp.mean(x, axis=-1, keepdims=True)
        xc = x - mu
        var = jnp.mean(xc * xc, axis=-1, keepdims=True)
        return xc * jax.lax.rsqrt(var + LN_EPS) * ln_g + ln_b

    def proj_ln(x_ref, wp_ref, bp_ref):
        # Linear -> LayerNorm (dropout p=0.5 is identity in eval mode).
        h = jnp.dot(x_ref[...].astype(bf16), wp_ref[...], preferred_element_type=f32)
        return layernorm(h + bp_ref[...])

    # Stack the three modality tokens along the sublane axis:
    # rows [0,TB)=T, [TB,2TB)=V, [2TB,3TB)=A.  TB is a multiple of 8 -> slices are tile-aligned.
    h_stack = jnp.concatenate(
        [proj_ln(t_ref, wp_t_ref, bp_t_ref),
         proj_ln(v_ref, wp_v_ref, bp_v_ref),
         proj_ln(a_ref, wp_a_ref, bp_a_ref)], axis=0)              # (3TB, D) f32

    # shared Linear and Q/K/V each applied ONCE to the stacked slab (one weight load each).
    x_sh = jnp.dot(h_stack.astype(bf16), w_sh_ref[...], preferred_element_type=f32) + b_sh_ref[...]
    x_sh_b = x_sh.astype(bf16)
    q_stack = jnp.dot(x_sh_b, w_q_ref[...], preferred_element_type=f32)
    k_stack = jnp.dot(x_sh_b, w_k_ref[...], preferred_element_type=f32)
    v_stack = jnp.dot(x_sh_b, w_v_ref[...], preferred_element_type=f32)

    hmask = hmask_ref[...]        # (D, nh): per-head lane-segment sum
    hmask_t = hmask_t_ref[...]    # (nh, D): head -> lane-segment broadcast

    def tok(arr, i):
        # sublane-aligned static slice of an f32 stacked slab -> cheap view
        return arr[i * TB:(i + 1) * TB, :]

    att_tokens = []
    for i in range(3):
        q_i = tok(q_stack, i)
        # per-head scores vs the 3 key tokens: 3 back-to-back dots with the same resident RHS
        s = [jnp.dot(q_i * tok(k_stack, j), hmask, preferred_element_type=f32) * norm_fact
             for j in range(3)]                                     # 3 x (TB, nh)
        m = jnp.maximum(jnp.maximum(s[0], s[1]), s[2])
        e = [jnp.exp(s[0] - m), jnp.exp(s[1] - m), jnp.exp(s[2] - m)]
        inv = pl.reciprocal(e[0] + e[1] + e[2], approx=True)        # softmax denom on the EUP
        att_i = None
        for j in range(3):
            # broadcast per-head weights back to their dk lanes, then weight v_j
            w_full = jnp.dot(e[j] * inv, hmask_t, preferred_element_type=f32)   # (TB, D)
            contrib = w_full * tok(v_stack, j)
            att_i = contrib if att_i is None else att_i + contrib
        att_tokens.append(att_i)                                    # (TB, D)

    # residual + post-attention LayerNorm on the stacked slab (attn dropout p=0.1: identity, eval)
    out_stack = layernorm(jnp.concatenate(att_tokens, axis=0) + x_sh)   # (3TB, D) f32

    # fc1 -> bn1(eval) -> fc2 folded into one affine; weight row-split per token (no concat of the
    # flattened features), output columns zero-padded to OUT_LANES -> lane-dense store.
    acc = jnp.dot(tok(out_stack, 0).astype(bf16), w_eff_t_ref[...], preferred_element_type=f32)
    acc = acc + jnp.dot(tok(out_stack, 1).astype(bf16), w_eff_v_ref[...], preferred_element_type=f32)
    acc = acc + jnp.dot(tok(out_stack, 2).astype(bf16), w_eff_a_ref[...], preferred_element_type=f32)
    acc = acc + b_eff_ref[...]
    o_ref[...] = acc.astype(o_ref.dtype)


def trimodal_cmd_forward(T, V, A, params, *, block_b=32):
    """Eval-mode Trimodal_CMD forward. T:(B,dim_T,1), V:(B,dim_V,1), A:(B,dim_A,1) -> (B,2)."""
    B, dim_T, n_T = T.shape
    _, dim_V, n_V = V.shape
    _, dim_A, n_A = A.shape
    # The reference fc1 has in_features = dim_v*3, which requires one token per modality.
    assert n_T == n_V == n_A == 1, "reference fc1 shape requires length_x=length_y=length_z=1"
    D = params["w_sh"].shape[0]
    assert D % NUM_HEADS == 0, "dim_v must be a multiple of num_heads"
    dk = D // NUM_HEADS

    f32, bf16 = jnp.float32, jnp.bfloat16

    T2 = T[:, :, 0].astype(f32)
    V2 = V[:, :, 0].astype(f32)
    A2 = A[:, :, 0].astype(f32)

    # Batch-tile: sublane-aligned, small enough to bound vreg pressure, and clamped so the
    # 'parallel' grid axis has >= 2 steps whenever B > 8 (keeps both v7x TensorCores busy).
    block_b = max(8, (int(block_b) // 8) * 8)
    two_step_tile = max(8, _round_up((B + 1) // 2, 8))
    block_b = min(block_b, two_step_tile)
    b_pad = _round_up(B, block_b)
    if b_pad != B:
        pad = ((0, b_pad - B), (0, 0))
        T2, V2, A2 = jnp.pad(T2, pad), jnp.pad(V2, pad), jnp.pad(A2, pad)

    # Head-segment sum / broadcast matrices: precomputed once, resident in VMEM across the grid.
    head_of_lane = jnp.arange(D, dtype=jnp.int32) // dk
    hmask = (head_of_lane[:, None] == jnp.arange(NUM_HEADS, dtype=jnp.int32)[None, :]).astype(f32)
    hmask_t = hmask.T

    # fc1 -> bn1(eval) -> fc2 folded into a single affine map (no nonlinearity in between);
    # pad the 2 output columns to OUT_LANES so the kernel writes a lane-dense block.
    w_fc1 = params["w_fc1"].astype(f32)
    b_fc1 = params["b_fc1"].astype(f32)
    bn_scale = params["bn_scale"].astype(f32)
    bn_shift = params["bn_shift"].astype(f32)
    w_fc2 = params["w_fc2"].astype(f32)
    b_fc2 = params["b_fc2"].astype(f32)
    w_eff = (w_fc1 * bn_scale) @ w_fc2                       # (3D, 2)
    b_eff = (b_fc1 * bn_scale + bn_shift) @ w_fc2 + b_fc2    # (1, 2)
    n_out = w_fc2.shape[1]
    w_eff_pad = jnp.zeros((3 * D, OUT_LANES), f32).at[:, :n_out].set(w_eff)
    b_eff_pad = jnp.zeros((1, OUT_LANES), f32).at[:, :n_out].set(b_eff)

    weight_args = (
        params["wp_t"].astype(bf16), params["bp_t"].astype(f32),
        params["wp_v"].astype(bf16), params["bp_v"].astype(f32),
        params["wp_a"].astype(bf16), params["bp_a"].astype(f32),
        params["ln_g"].astype(f32), params["ln_b"].astype(f32),
        params["w_sh"].astype(bf16), params["b_sh"].astype(f32),
        params["w_q"].astype(bf16), params["w_k"].astype(bf16), params["w_v"].astype(bf16),
        hmask, hmask_t,
        w_eff_pad[:D].astype(bf16), w_eff_pad[D:2 * D].astype(bf16), w_eff_pad[2 * D:].astype(bf16),
        b_eff_pad,
    )

    def batch_spec(d):
        return pl.BlockSpec((block_b, d), lambda b: (b, 0))

    def resident_spec(arr):
        # full-array block, constant index map -> stays resident in VMEM across the grid
        return pl.BlockSpec(arr.shape, lambda b: (0, 0))

    out = pl.pallas_call(
        _trimodal_cmd_kernel,
        out_shape=jax.ShapeDtypeStruct((b_pad, OUT_LANES), f32),
        grid_spec=pltpu.PrefetchScalarGridSpec(
            num_scalar_prefetch=0,
            grid=(b_pad // block_b,),
            in_specs=[batch_spec(dim_T), batch_spec(dim_V), batch_spec(dim_A)]
                     + [resident_spec(w) for w in weight_args],
            out_specs=pl.BlockSpec((block_b, OUT_LANES), lambda b: (b, 0)),
        ),
        compiler_params=pltpu.CompilerParams(
            dimension_semantics=("parallel",),
        ),
    )(T2, V2, A2, *weight_args)
    return out[:B, :n_out]


def init_params(key, dim_T, dim_V, dim_A, dim_v, fc_hidden=32, fc_out=2):
    D = dim_v
    ks = jax.random.split(key, 15)

    def lin(k, fan_in, fan_out, bias=True):
        kw, kb = jax.random.split(k)
        bound = 1.0 / math.sqrt(fan_in)
        w = jax.random.uniform(kw, (fan_in, fan_out), jnp.float32, minval=-bound, maxval=bound)
        b = (jax.random.uniform(kb, (1, fan_out), jnp.float32, minval=-bound, maxval=bound)
             if bias else None)
        return w, b

    wp_t, bp_t = lin(ks[0], dim_T, D)
    wp_v, bp_v = lin(ks[1], dim_V, D)
    wp_a, bp_a = lin(ks[2], dim_A, D)
    w_sh, b_sh = lin(ks[3], D, D)
    w_q, _ = lin(ks[4], D, D, bias=False)
    w_k, _ = lin(ks[5], D, D, bias=False)
    w_v, _ = lin(ks[6], D, D, bias=False)
    w_fc1, b_fc1 = lin(ks[7], 3 * D, fc_hidden)
    w_fc2, b_fc2 = lin(ks[8], fc_hidden, fc_out)

    ln_g = 1.0 + 0.1 * jax.random.normal(ks[9], (1, D), jnp.float32)
    ln_b = 0.1 * jax.random.normal(ks[10], (1, D), jnp.float32)
    bn_g = 1.0 + 0.1 * jax.random.normal(ks[11], (1, fc_hidden), jnp.float32)
    bn_b = 0.1 * jax.random.normal(ks[12], (1, fc_hidden), jnp.float32)
    bn_mean = 0.1 * jax.random.normal(ks[13], (1, fc_hidden), jnp.float32)
    bn_var = 1.0 + 0.2 * jnp.abs(jax.random.normal(ks[14], (1, fc_hidden), jnp.float32))

    bn_scale = bn_g / jnp.sqrt(bn_var + BN_EPS)
    bn_shift = bn_b - bn_mean * bn_scale

    return dict(
        wp_t=wp_t, bp_t=bp_t, wp_v=wp_v, bp_v=bp_v, wp_a=wp_a, bp_a=bp_a,
        ln_g=ln_g, ln_b=ln_b, w_sh=w_sh, b_sh=b_sh,
        w_q=w_q, w_k=w_k, w_v=w_v,
        w_fc1=w_fc1, b_fc1=b_fc1,
        bn_g=bn_g, bn_b=bn_b, bn_mean=bn_mean, bn_var=bn_var,
        bn_scale=bn_scale, bn_shift=bn_shift,
        w_fc2=w_fc2, b_fc2=b_fc2,
    )


def _reference(T, V, A, params):
    """Pure-JAX f32 mirror of the PyTorch eval-mode forward (for verification)."""
    ln_g, ln_b = params["ln_g"], params["ln_b"]

    def ln(x):
        mu = jnp.mean(x, axis=-1, keepdims=True)
        var = jnp.mean((x - mu) ** 2, axis=-1, keepdims=True)
        return (x - mu) / jnp.sqrt(var + LN_EPS) * ln_g + ln_b

    def branch(x, wp, bp):
        x = jnp.transpose(x, (0, 2, 1))                 # (B, 1, dim)
        x = ln(jnp.einsum("bnd,de->bne", x, wp) + bp)
        return jnp.einsum("bnd,de->bne", x, params["w_sh"]) + params["b_sh"]

    t = branch(T, params["wp_t"], params["bp_t"])
    v = branch(V, params["wp_v"], params["bp_v"])
    a = branch(A, params["wp_a"], params["bp_a"])
    x = jnp.concatenate([t, v, a], axis=1)              # (B, 3, D)
    residual = x

    B_, n, D = x.shape
    nh, dk = NUM_HEADS, D // NUM_HEADS
    q = jnp.einsum("bnd,de->bne", x, params["w_q"]).reshape(B_, n, nh, dk).transpose(0, 2, 1, 3)
    k = jnp.einsum("bnd,de->bne", x, params["w_k"]).reshape(B_, n, nh, dk).transpose(0, 2, 1, 3)
    vv = jnp.einsum("bnd,de->bne", x, params["w_v"]).reshape(B_, n, nh, dk).transpose(0, 2, 1, 3)
    dist = jnp.einsum("bhnd,bhmd->bhnm", q, k) / math.sqrt(dk)
    dist = jax.nn.softmax(dist, axis=-1)
    att = jnp.einsum("bhnm,bhmd->bhnd", dist, vv)
    att = att.transpose(0, 2, 1, 3).reshape(B_, n, D)

    x = ln(att + residual)
    flat = x.reshape(B_, -1)
    h1 = flat @ params["w_fc1"] + params["b_fc1"]
    h1 = (h1 - params["bn_mean"]) / jnp.sqrt(params["bn_var"] + BN_EPS) * params["bn_g"] + params["bn_b"]
    return h1 @ params["w_fc2"] + params["b_fc2"]


if __name__ == "__main__":
    key = jax.random.PRNGKey(0)
    B = 16
    n_T = n_V = n_A = 1            # required by the reference fc1 (in_features = dim_v*3)
    dim_T, dim_V, dim_A = 32, 24, 16
    dim_v = 48                     # dim_k == dim_v, divisible by num_heads=6

    k_t, k_v, k_a, k_p = jax.random.split(key, 4)
    T = jax.random.normal(k_t, (B, dim_T, n_T), dtype=jnp.float32)
    V = jax.random.normal(k_v, (B, dim_V, n_V), dtype=jnp.float32)
    A = jax.random.normal(k_a, (B, dim_A, n_A), dtype=jnp.float32)

    params = init_params(k_p, dim_T, dim_V, dim_A, dim_v)

    out = trimodal_cmd_forward(T, V, A, params)   # block_b clamps to 8 here -> grid = (2,)
    out = jax.block_until_ready(out)

    ref = _reference(T, V, A, params)
    assert out.shape == (B, 2)
    max_err = float(jnp.max(jnp.abs(out - ref)))
    # bf16 MXU operands (weights + matmul LHS) -> slightly looser tolerance than a pure-f32 path.
    assert max_err < 3e-2, f"mismatch vs f32 reference (max abs err {max_err})"

    print("KERNEL_OK")
</pallas_src>

<mosaic_0001>
module attributes {stable_mosaic.version = 11 : i64} {
  func.func @_trimodal_cmd_kernel(%arg0: i32, %arg1: memref<8x32xf32, #tpu.memory_space<vmem>>, %arg2: memref<8x24xf32, #tpu.memory_space<vmem>>, %arg3: memref<8x16xf32, #tpu.memory_space<vmem>>, %arg4: memref<32x48xbf16, #tpu.memory_space<vmem>>, %arg5: memref<1x48xf32, #tpu.memory_space<vmem>>, %arg6: memref<24x48xbf16, #tpu.memory_space<vmem>>, %arg7: memref<1x48xf32, #tpu.memory_space<vmem>>, %arg8: memref<16x48xbf16, #tpu.memory_space<vmem>>, %arg9: memref<1x48xf32, #tpu.memory_space<vmem>>, %arg10: memref<1x48xf32, #tpu.memory_space<vmem>>, %arg11: memref<1x48xf32, #tpu.memory_space<vmem>>, %arg12: memref<48x48xbf16, #tpu.memory_space<vmem>>, %arg13: memref<1x48xf32, #tpu.memory_space<vmem>>, %arg14: memref<48x48xbf16, #tpu.memory_space<vmem>>, %arg15: memref<48x48xbf16, #tpu.memory_space<vmem>>, %arg16: memref<48x48xbf16, #tpu.memory_space<vmem>>, %arg17: memref<48x6xf32, #tpu.memory_space<vmem>>, %arg18: memref<6x48xf32, #tpu.memory_space<vmem>>, %arg19: memref<48x128xbf16, #tpu.memory_space<vmem>>, %arg20: memref<48x128xbf16, #tpu.memory_space<vmem>>, %arg21: memref<48x128xbf16, #tpu.memory_space<vmem>>, %arg22: memref<1x128xf32, #tpu.memory_space<vmem>>, %arg23: memref<8x128xf32, #tpu.memory_space<vmem>>) attributes {dimension_semantics = [#tpu.dimension_semantics<parallel>], iteration_bounds = array<i64: 2>, scalar_prefetch = 0 : i64, scratch_operands = 0 : i64, tpu.core_type = #tpu.core_type<tc>, window_params = [{transform_indices = @transform_0, window_bounds = array<i64: 8, 32>}, {transform_indices = @transform_1, window_bounds = array<i64: 8, 24>}, {transform_indices = @transform_2, window_bounds = array<i64: 8, 16>}, {pipeline_mode = #tpu.pipeline_mode<synchronous>, transform_indices = @transform_3, window_bounds = array<i64: 32, 48>}, {pipeline_mode = #tpu.pipeline_mode<synchronous>, transform_indices = @transform_4, window_bounds = array<i64: 1, 48>}, {pipeline_mode = #tpu.pipeline_mode<synchronous>, transform_indices = @transform_5, window_bounds = array<i64: 24, 48>}, {pipeline_mode = #tpu.pipeline_mode<synchronous>, transform_indices = @transform_6, window_bounds = array<i64: 1, 48>}, {pipeline_mode = #tpu.pipeline_mode<synchronous>, transform_indices = @transform_7, window_bounds = array<i64: 16, 48>}, {pipeline_mode = #tpu.pipeline_mode<synchronous>, transform_indices = @transform_8, window_bounds = array<i64: 1, 48>}, {pipeline_mode = #tpu.pipeline_mode<synchronous>, transform_indices = @transform_9, window_bounds = array<i64: 1, 48>}, {pipeline_mode = #tpu.pipeline_mode<synchronous>, transform_indices = @transform_10, window_bounds = array<i64: 1, 48>}, {pipeline_mode = #tpu.pipeline_mode<synchronous>, transform_indices = @transform_11, window_bounds = array<i64: 48, 48>}, {pipeline_mode = #tpu.pipeline_mode<synchronous>, transform_indices = @transform_12, window_bounds = array<i64: 1, 48>}, {pipeline_mode = #tpu.pipeline_mode<synchronous>, transform_indices = @transform_13, window_bounds = array<i64: 48, 48>}, {pipeline_mode = #tpu.pipeline_mode<synchronous>, transform_indices = @transform_14, window_bounds = array<i64: 48, 48>}, {pipeline_mode = #tpu.pipeline_mode<synchronous>, transform_indices = @transform_15, window_bounds = array<i64: 48, 48>}, {pipeline_mode = #tpu.pipeline_mode<synchronous>, transform_indices = @transform_16, window_bounds = array<i64: 48, 6>}, {pipeline_mode = #tpu.pipeline_mode<synchronous>, transform_indices = @transform_17, window_bounds = array<i64: 6, 48>}, {pipeline_mode = #tpu.pipeline_mode<synchronous>, transform_indices = @transform_18, window_bounds = array<i64: 48, 128>}, {pipeline_mode = #tpu.pipeline_mode<synchronous>, transform_indices = @transform_19, window_bounds = array<i64: 48, 128>}, {pipeline_mode = #tpu.pipeline_mode<synchronous>, transform_indices = @transform_20, window_bounds = array<i64: 48, 128>}, {pipeline_mode = #tpu.pipeline_mode<synchronous>, transform_indices = @transform_21, window_bounds = array<i64: 1, 128>}, {transform_indices = @transform_22, window_bounds = array<i64: 8, 128>}]} {
    %c0 = arith.constant 0 : index
    %c0_0 = arith.constant 0 : index
    %0 = vector.load %arg10[%c0, %c0_0] : memref<1x48xf32, #tpu.memory_space<vmem>>, vector<1x48xf32>
    %c0_1 = arith.constant 0 : index
    %c0_2 = arith.constant 0 : index
    %1 = vector.load %arg11[%c0_1, %c0_2] : memref<1x48xf32, #tpu.memory_space<vmem>>, vector<1x48xf32>
    %c0_3 = arith.constant 0 : index
    %c0_4 = arith.constant 0 : index
    %2 = vector.load %arg1[%c0_3, %c0_4] : memref<8x32xf32, #tpu.memory_space<vmem>>, vector<8x32xf32>
    %3 = arith.truncf %2 : vector<8x32xf32> to vector<8x32xbf16>
    %c0_5 = arith.constant 0 : index
    %c0_6 = arith.constant 0 : index
    %4 = vector.load %arg4[%c0_5, %c0_6] : memref<32x48xbf16, #tpu.memory_space<vmem>>, vector<32x48xbf16>
    %cst = arith.constant dense<0.000000e+00> : vector<8x48xf32>
    %5 = tpu.matmul %3, %4, %cst {dimension_numbers = #tpu.dot_dimension_numbers<[1], [0], [0], [1], [0, 0, 1, 1], [], []>} : vector<8x32xbf16>, vector<32x48xbf16>, vector<8x48xf32> -> vector<8x48xf32>
    %c0_7 = arith.constant 0 : index
    %c0_8 = arith.constant 0 : index
    %6 = vector.load %arg5[%c0_7, %c0_8] : memref<1x48xf32, #tpu.memory_space<vmem>>, vector<1x48xf32>
    %7 = vector.broadcast %6 : vector<1x48xf32> to vector<8x48xf32>
    %8 = arith.addf %5, %7 : vector<8x48xf32>
    %cst_9 = arith.constant dense<0.000000e+00> : vector<8xf32>
    %9 = vector.multi_reduction <add>, %8, %cst_9 [1] : vector<8x48xf32> to vector<8xf32>
    %10 = vector.shape_cast %9 : vector<8xf32> to vector<8x1xf32>
    %cst_10 = arith.constant 4.800000e+01 : f32
    %11 = vector.broadcast %cst_10 : f32 to vector<8x1xf32>
    %12 = arith.divf %10, %11 : vector<8x1xf32>
    %13 = vector.broadcast %12 : vector<8x1xf32> to vector<8x48xf32>
    %14 = arith.subf %8, %13 : vector<8x48xf32>
    %15 = arith.mulf %14, %14 : vector<8x48xf32>
    %cst_11 = arith.constant dense<0.000000e+00> : vector<8xf32>
    %16 = vector.multi_reduction <add>, %15, %cst_11 [1] : vector<8x48xf32> to vector<8xf32>
    %17 = vector.shape_cast %16 : vector<8xf32> to vector<8x1xf32>
    %cst_12 = arith.constant 4.800000e+01 : f32
    %18 = vector.broadcast %cst_12 : f32 to vector<8x1xf32>
    %19 = arith.divf %17, %18 : vector<8x1xf32>
    %cst_13 = arith.constant 9.99999974E-6 : f32
    %20 = vector.broadcast %cst_13 : f32 to vector<8x1xf32>
    %21 = arith.addf %19, %20 : vector<8x1xf32>
    %22 = math.rsqrt %21 : vector<8x1xf32>
    %23 = vector.broadcast %22 : vector<8x1xf32> to vector<8x48xf32>
    %24 = arith.mulf %14, %23 : vector<8x48xf32>
    %25 = vector.broadcast %0 : vector<1x48xf32> to vector<8x48xf32>
    %26 = arith.mulf %24, %25 : vector<8x48xf32>
    %27 = vector.broadcast %1 : vector<1x48xf32> to vector<8x48xf32>
    %28 = arith.addf %26, %27 : vector<8x48xf32>
    %c0_14 = arith.constant 0 : index
    %c0_15 = arith.constant 0 : index
    %29 = vector.load %arg2[%c0_14, %c0_15] : memref<8x24xf32, #tpu.memory_space<vmem>>, vector<8x24xf32>
    %30 = arith.truncf %29 : vector<8x24xf32> to vector<8x24xbf16>
    %c0_16 = arith.constant 0 : index
    %c0_17 = arith.constant 0 : index
    %31 = vector.load %arg6[%c0_16, %c0_17] : memref<24x48xbf16, #tpu.memory_space<vmem>>, vector<24x48xbf16>
    %cst_18 = arith.constant dense<0.000000e+00> : vector<8x48xf32>
    %32 = tpu.matmul %30, %31, %cst_18 {dimension_numbers = #tpu.dot_dimension_numbers<[1], [0], [0], [1], [0, 0, 1, 1], [], []>} : vector<8x24xbf16>, vector<24x48xbf16>, vector<8x48xf32> -> vector<8x48xf32>
    %c0_19 = arith.constant 0 : index
    %c0_20 = arith.constant 0 : index
    %33 = vector.load %arg7[%c0_19, %c0_20] : memref<1x48xf32, #tpu.memory_space<vmem>>, vector<1x48xf32>
    %34 = vector.broadcast %33 : vector<1x48xf32> to vector<8x48xf32>
    %35 = arith.addf %32, %34 : vector<8x48xf32>
    %cst_21 = arith.constant dense<0.000000e+00> : vector<8xf32>
    %36 = vector.multi_reduction <add>, %35, %cst_21 [1] : vector<8x48xf32> to vector<8xf32>
    %37 = vector.shape_cast %36 : vector<8xf32> to vector<8x1xf32>
    %cst_22 = arith.constant 4.800000e+01 : f32
    %38 = vector.broadcast %cst_22 : f32 to vector<8x1xf32>
    %39 = arith.divf %37, %38 : vector<8x1xf32>
    %40 = vector.broadcast %39 : vector<8x1xf32> to vector<8x48xf32>
    %41 = arith.subf %35, %40 : vector<8x48xf32>
    %42 = arith.mulf %41, %41 : vector<8x48xf32>
    %cst_23 = arith.constant dense<0.000000e+00> : vector<8xf32>
    %43 = vector.multi_reduction <add>, %42, %cst_23 [1] : vector<8x48xf32> to vector<8xf32>
    %44 = vector.shape_cast %43 : vector<8xf32> to vector<8x1xf32>
    %cst_24 = arith.constant 4.800000e+01 : f32
    %45 = vector.broadcast %cst_24 : f32 to vector<8x1xf32>
    %46 = arith.divf %44, %45 : vector<8x1xf32>
    %cst_25 = arith.constant 9.99999974E-6 : f32
    %47 = vector.broadcast %cst_25 : f32 to vector<8x1xf32>
    %48 = arith.addf %46, %47 : vector<8x1xf32>
    %49 = math.rsqrt %48 : vector<8x1xf32>
    %50 = vector.broadcast %49 : vector<8x1xf32> to vector<8x48xf32>
    %51 = arith.mulf %41, %50 : vector<8x48xf32>
    %52 = vector.broadcast %0 : vector<1x48xf32> to vector<8x48xf32>
    %53 = arith.mulf %51, %52 : vector<8x48xf32>
    %54 = vector.broadcast %1 : vector<1x48xf32> to vector<8x48xf32>
    %55 = arith.addf %53, %54 : vector<8x48xf32>
    %c0_26 = arith.constant 0 : index
    %c0_27 = arith.constant 0 : index
    %56 = vector.load %arg3[%c0_26, %c0_27] : memref<8x16xf32, #tpu.memory_space<vmem>>, vector<8x16xf32>
    %57 = arith.truncf %56 : vector<8x16xf32> to vector<8x16xbf16>
    %c0_28 = arith.constant 0 : index
    %c0_29 = arith.constant 0 : index
    %58 = vector.load %arg8[%c0_28, %c0_29] : memref<16x48xbf16, #tpu.memory_space<vmem>>, vector<16x48xbf16>
    %cst_30 = arith.constant dense<0.000000e+00> : vector<8x48xf32>
    %59 = tpu.matmul %57, %58, %cst_30 {dimension_numbers = #tpu.dot_dimension_numbers<[1], [0], [0], [1], [0, 0, 1, 1], [], []>} : vector<8x16xbf16>, vector<16x48xbf16>, vector<8x48xf32> -> vector<8x48xf32>
    %c0_31 = arith.constant 0 : index
    %c0_32 = arith.constant 0 : index
    %60 = vector.load %arg9[%c0_31, %c0_32] : memref<1x48xf32, #tpu.memory_space<vmem>>, vector<1x48xf32>
    %61 = vector.broadcast %60 : vector<1x48xf32> to vector<8x48xf32>
    %62 = arith.addf %59, %61 : vector<8x48xf32>
    %cst_33 = arith.constant dense<0.000000e+00> : vector<8xf32>
    %63 = vector.multi_reduction <add>, %62, %cst_33 [1] : vector<8x48xf32> to vector<8xf32>
    %64 = vector.shape_cast %63 : vector<8xf32> to vector<8x1xf32>
    %cst_34 = arith.constant 4.800000e+01 : f32
    %65 = vector.broadcast %cst_34 : f32 to vector<8x1xf32>
    %66 = arith.divf %64, %65 : vector<8x1xf32>
    %67 = vector.broadcast %66 : vector<8x1xf32> to vector<8x48xf32>
    %68 = arith.subf %62, %67 : vector<8x48xf32>
    %69 = arith.mulf %68, %68 : vector<8x48xf32>
    %cst_35 = arith.constant dense<0.000000e+00> : vector<8xf32>
    %70 = vector.multi_reduction <add>, %69, %cst_35 [1] : vector<8x48xf32> to vector<8xf32>
    %71 = vector.shape_cast %70 : vector<8xf32> to vector<8x1xf32>
    %cst_36 = arith.constant 4.800000e+01 : f32
    %72 = vector.broadcast %cst_36 : f32 to vector<8x1xf32>
    %73 = arith.divf %71, %72 : vector<8x1xf32>
    %cst_37 = arith.constant 9.99999974E-6 : f32
    %74 = vector.broadcast %cst_37 : f32 to vector<8x1xf32>
    %75 = arith.addf %73, %74 : vector<8x1xf32>
    %76 = math.rsqrt %75 : vector<8x1xf32>
    %77 = vector.broadcast %76 : vector<8x1xf32> to vector<8x48xf32>
    %78 = arith.mulf %68, %77 : vector<8x48xf32>
    %79 = vector.broadcast %0 : vector<1x48xf32> to vector<8x48xf32>
    %80 = arith.mulf %78, %79 : vector<8x48xf32>
    %81 = vector.broadcast %1 : vector<1x48xf32> to vector<8x48xf32>
    %82 = arith.addf %80, %81 : vector<8x48xf32>
    %83 = tpu.concatenate %28, %55, %82 in 0 : vector<8x48xf32>, vector<8x48xf32>, vector<8x48xf32> -> vector<24x48xf32>
    %84 = arith.truncf %83 : vector<24x48xf32> to vector<24x48xbf16>
    %c0_38 = arith.constant 0 : index
    %c0_39 = arith.constant 0 : index
    %85 = vector.load %arg12[%c0_38, %c0_39] : memref<48x48xbf16, #tpu.memory_space<vmem>>, vector<48x48xbf16>
    %cst_40 = arith.constant dense<0.000000e+00> : vector<24x48xf32>
    %86 = tpu.matmul %84, %85, %cst_40 {dimension_numbers = #tpu.dot_dimension_numbers<[1], [0], [0], [1], [0, 0, 1, 1], [], []>} : vector<24x48xbf16>, vector<48x48xbf16>, vector<24x48xf32> -> vector<24x48xf32>
    %c0_41 = arith.constant 0 : index
    %c0_42 = arith.constant 0 : index
    %87 = vector.load %arg13[%c0_41, %c0_42] : memref<1x48xf32, #tpu.memory_space<vmem>>, vector<1x48xf32>
    %88 = vector.broadcast %87 : vector<1x48xf32> to vector<24x48xf32>
    %89 = arith.addf %86, %88 : vector<24x48xf32>
    %90 = arith.truncf %89 : vector<24x48xf32> to vector<24x48xbf16>
    %c0_43 = arith.constant 0 : index
    %c0_44 = arith.constant 0 : index
    %91 = vector.load %arg14[%c0_43, %c0_44] : memref<48x48xbf16, #tpu.memory_space<vmem>>, vector<48x48xbf16>
    %cst_45 = arith.constant dense<0.000000e+00> : vector<24x48xf32>
    %92 = tpu.matmul %90, %91, %cst_45 {dimension_numbers = #tpu.dot_dimension_numbers<[1], [0], [0], [1], [0, 0, 1, 1], [], []>} : vector<24x48xbf16>, vector<48x48xbf16>, vector<24x48xf32> -> vector<24x48xf32>
    %c0_46 = arith.constant 0 : index
    %c0_47 = arith.constant 0 : index
    %93 = vector.load %arg15[%c0_46, %c0_47] : memref<48x48xbf16, #tpu.memory_space<vmem>>, vector<48x48xbf16>
    %cst_48 = arith.constant dense<0.000000e+00> : vector<24x48xf32>
    %94 = tpu.matmul %90, %93, %cst_48 {dimension_numbers = #tpu.dot_dimension_numbers<[1], [0], [0], [1], [0, 0, 1, 1], [], []>} : vector<24x48xbf16>, vector<48x48xbf16>, vector<24x48xf32> -> vector<24x48xf32>
    %c0_49 = arith.constant 0 : index
    %c0_50 = arith.constant 0 : index
    %95 = vector.load %arg16[%c0_49, %c0_50] : memref<48x48xbf16, #tpu.memory_space<vmem>>, vector<48x48xbf16>
    %cst_51 = arith.constant dense<0.000000e+00> : vector<24x48xf32>
    %96 = tpu.matmul %90, %95, %cst_51 {dimension_numbers = #tpu.dot_dimension_numbers<[1], [0], [0], [1], [0, 0, 1, 1], [], []>} : vector<24x48xbf16>, vector<48x48xbf16>, vector<24x48xf32> -> vector<24x48xf32>
    %c0_52 = arith.constant 0 : index
    %c0_53 = arith.constant 0 : index
    %97 = vector.load %arg17[%c0_52, %c0_53] : memref<48x6xf32, #tpu.memory_space<vmem>>, vector<48x6xf32>
    %c0_54 = arith.constant 0 : index
    %c0_55 = arith.constant 0 : index
    %98 = vector.load %arg18[%c0_54, %c0_55] : memref<6x48xf32, #tpu.memory_space<vmem>>, vector<6x48xf32>
    %99 = vector.extract_strided_slice %92 {offsets = [0, 0], sizes = [8, 48], strides = [1, 1]} : vector<24x48xf32> to vector<8x48xf32>
    %100 = vector.extract_strided_slice %94 {offsets = [0, 0], sizes = [8, 48], strides = [1, 1]} : vector<24x48xf32> to vector<8x48xf32>
    %101 = arith.mulf %99, %100 : vector<8x48xf32>
    %cst_56 = arith.constant dense<0.000000e+00> : vector<8x6xf32>
    %102 = tpu.matmul %101, %97, %cst_56 {dimension_numbers = #tpu.dot_dimension_numbers<[1], [0], [0], [1], [0, 0, 1, 1], [], []>} : vector<8x48xf32>, vector<48x6xf32>, vector<8x6xf32> -> vector<8x6xf32>
    %cst_57 = arith.constant 0.353553385 : f32
    %103 = vector.broadcast %cst_57 : f32 to vector<8x6xf32>
    %104 = arith.mulf %102, %103 : vector<8x6xf32>
    %105 = vector.extract_strided_slice %94 {offsets = [8, 0], sizes = [8, 48], strides = [1, 1]} : vector<24x48xf32> to vector<8x48xf32>
    %106 = arith.mulf %99, %105 : vector<8x48xf32>
    %cst_58 = arith.constant dense<0.000000e+00> : vector<8x6xf32>
    %107 = tpu.matmul %106, %97, %cst_58 {dimension_numbers = #tpu.dot_dimension_numbers<[1], [0], [0], [1], [0, 0, 1, 1], [], []>} : vector<8x48xf32>, vector<48x6xf32>, vector<8x6xf32> -> vector<8x6xf32>
    %cst_59 = arith.constant 0.353553385 : f32
    %108 = vector.broadcast %cst_59 : f32 to vector<8x6xf32>
    %109 = arith.mulf %107, %108 : vector<8x6xf32>
    %110 = vector.extract_strided_slice %94 {offsets = [16, 0], sizes = [8, 48], strides = [1, 1]} : vector<24x48xf32> to vector<8x48xf32>
    %111 = arith.mulf %99, %110 : vector<8x48xf32>
    %cst_60 = arith.constant dense<0.000000e+00> : vector<8x6xf32>
    %112 = tpu.matmul %111, %97, %cst_60 {dimension_numbers = #tpu.dot_dimension_numbers<[1], [0], [0], [1], [0, 0, 1, 1], [], []>} : vector<8x48xf32>, vector<48x6xf32>, vector<8x6xf32> -> vector<8x6xf32>
    %cst_61 = arith.constant 0.353553385 : f32
    %113 = vector.broadcast %cst_61 : f32 to vector<8x6xf32>
    %114 = arith.mulf %112, %113 : vector<8x6xf32>
    %115 = arith.maximumf %104, %109 : vector<8x6xf32>
    %116 = arith.maximumf %115, %114 : vector<8x6xf32>
    %117 = arith.subf %104, %116 : vector<8x6xf32>
    %118 = math.exp %117 : vector<8x6xf32>
    %119 = arith.subf %109, %116 : vector<8x6xf32>
    %120 = math.exp %119 : vector<8x6xf32>
    %121 = arith.subf %114, %116 : vector<8x6xf32>
    %122 = math.exp %121 : vector<8x6xf32>
    %123 = arith.addf %118, %120 : vector<8x6xf32>
    %124 = arith.addf %123, %122 : vector<8x6xf32>
    %125 = tpu.reciprocal %124 {approx = true} : vector<8x6xf32> -> vector<8x6xf32>
    %126 = arith.mulf %118, %125 : vector<8x6xf32>
    %cst_62 = arith.constant dense<0.000000e+00> : vector<8x48xf32>
    %127 = tpu.matmul %126, %98, %cst_62 {dimension_numbers = #tpu.dot_dimension_numbers<[1], [0], [0], [1], [0, 0, 1, 1], [], []>} : vector<8x6xf32>, vector<6x48xf32>, vector<8x48xf32> -> vector<8x48xf32>
    %128 = vector.extract_strided_slice %96 {offsets = [0, 0], sizes = [8, 48], strides = [1, 1]} : vector<24x48xf32> to vector<8x48xf32>
    %129 = arith.mulf %127, %128 : vector<8x48xf32>
    %130 = arith.mulf %120, %125 : vector<8x6xf32>
    %cst_63 = arith.constant dense<0.000000e+00> : vector<8x48xf32>
    %131 = tpu.matmul %130, %98, %cst_63 {dimension_numbers = #tpu.dot_dimension_numbers<[1], [0], [0], [1], [0, 0, 1, 1], [], []>} : vector<8x6xf32>, vector<6x48xf32>, vector<8x48xf32> -> vector<8x48xf32>
    %132 = vector.extract_strided_slice %96 {offsets = [8, 0], sizes = [8, 48], strides = [1, 1]} : vector<24x48xf32> to vector<8x48xf32>
    %133 = arith.mulf %131, %132 : vector<8x48xf32>
    %134 = arith.addf %129, %133 : vector<8x48xf32>
    %135 = arith.mulf %122, %125 : vector<8x6xf32>
    %cst_64 = arith.constant dense<0.000000e+00> : vector<8x48xf32>
    %136 = tpu.matmul %135, %98, %cst_64 {dimension_numbers = #tpu.dot_dimension_numbers<[1], [0], [0], [1], [0, 0, 1, 1], [], []>} : vector<8x6xf32>, vector<6x48xf32>, vector<8x48xf32> -> vector<8x48xf32>
    %137 = vector.extract_strided_slice %96 {offsets = [16, 0], sizes = [8, 48], strides = [1, 1]} : vector<24x48xf32> to vector<8x48xf32>
    %138 = arith.mulf %136, %137 : vector<8x48xf32>
    %139 = arith.addf %134, %138 : vector<8x48xf32>
    %140 = vector.extract_strided_slice %92 {offsets = [8, 0], sizes = [8, 48], strides = [1, 1]} : vector<24x48xf32> to vector<8x48xf32>
    %141 = vector.extract_strided_slice %94 {offsets = [0, 0], sizes = [8, 48], strides = [1, 1]} : vector<24x48xf32> to vector<8x48xf32>
    %142 = arith.mulf %140, %141 : vector<8x48xf32>
    %cst_65 = arith.constant dense<0.000000e+00> : vector<8x6xf32>
    %143 = tpu.matmul %142, %97, %cst_65 {dimension_numbers = #tpu.dot_dimension_numbers<[1], [0], [0], [1], [0, 0, 1, 1], [], []>} : vector<8x48xf32>, vector<48x6xf32>, vector<8x6xf32> -> vector<8x6xf32>
    %cst_66 = arith.constant 0.353553385 : f32
    %144 = vector.broadcast %cst_66 : f32 to vector<8x6xf32>
    %145 = arith.mulf %143, %144 : vector<8x6xf32>
    %146 = vector.extract_strided_slice %94 {offsets = [8, 0], sizes = [8, 48], strides = [1, 1]} : vector<24x48xf32> to vector<8x48xf32>
    %147 = arith.mulf %140, %146 : vector<8x48xf32>
    %cst_67 = arith.constant dense<0.000000e+00> : vector<8x6xf32>
    %148 = tpu.matmul %147, %97, %cst_67 {dimension_numbers = #tpu.dot_dimension_numbers<[1], [0], [0], [1], [0, 0, 1, 1], [], []>} : vector<8x48xf32>, vector<48x6xf32>, vector<8x6xf32> -> vector<8x6xf32>
    %cst_68 = arith.constant 0.353553385 : f32
    %149 = vector.broadcast %cst_68 : f32 to vector<8x6xf32>
    %150 = arith.mulf %148, %149 : vector<8x6xf32>
    %151 = vector.extract_strided_slice %94 {offsets = [16, 0], sizes = [8, 48], strides = [1, 1]} : vector<24x48xf32> to vector<8x48xf32>
    %152 = arith.mulf %140, %151 : vector<8x48xf32>
    %cst_69 = arith.constant dense<0.000000e+00> : vector<8x6xf32>
    %153 = tpu.matmul %152, %97, %cst_69 {dimension_numbers = #tpu.dot_dimension_numbers<[1], [0], [0], [1], [0, 0, 1, 1], [], []>} : vector<8x48xf32>, vector<48x6xf32>, vector<8x6xf32> -> vector<8x6xf32>
    %cst_70 = arith.constant 0.353553385 : f32
    %154 = vector.broadcast %cst_70 : f32 to vector<8x6xf32>
    %155 = arith.mulf %153, %154 : vector<8x6xf32>
    %156 = arith.maximumf %145, %150 : vector<8x6xf32>
    %157 = arith.maximumf %156, %155 : vector<8x6xf32>
    %158 = arith.subf %145, %157 : vector<8x6xf32>
    %159 = math.exp %158 : vector<8x6xf32>
    %160 = arith.subf %150, %157 : vector<8x6xf32>
    %161 = math.exp %160 : vector<8x6xf32>
    %162 = arith.subf %155, %157 : vector<8x6xf32>
    %163 = math.exp %162 : vector<8x6xf32>
    %164 = arith.addf %159, %161 : vector<8x6xf32>
    %165 = arith.addf %164, %163 : vector<8x6xf32>
    %166 = tpu.reciprocal %165 {approx = true} : vector<8x6xf32> -> vector<8x6xf32>
    %167 = arith.mulf %159, %166 : vector<8x6xf32>
    %cst_71 = arith.constant dense<0.000000e+00> : vector<8x48xf32>
    %168 = tpu.matmul %167, %98, %cst_71 {dimension_numbers = #tpu.dot_dimension_numbers<[1], [0], [0], [1], [0, 0, 1, 1], [], []>} : vector<8x6xf32>, vector<6x48xf32>, vector<8x48xf32> -> vector<8x48xf32>
    %169 = vector.extract_strided_slice %96 {offsets = [0, 0], sizes = [8, 48], strides = [1, 1]} : vector<24x48xf32> to vector<8x48xf32>
    %170 = arith.mulf %168, %169 : vector<8x48xf32>
    %171 = arith.mulf %161, %166 : vector<8x6xf32>
    %cst_72 = arith.constant dense<0.000000e+00> : vector<8x48xf32>
    %172 = tpu.matmul %171, %98, %cst_72 {dimension_numbers = #tpu.dot_dimension_numbers<[1], [0], [0], [1], [0, 0, 1, 1], [], []>} : vector<8x6xf32>, vector<6x48xf32>, vector<8x48xf32> -> vector<8x48xf32>
    %173 = vector.extract_strided_slice %96 {offsets = [8, 0], sizes = [8, 48], strides = [1, 1]} : vector<24x48xf32> to vector<8x48xf32>
    %174 = arith.mulf %172, %173 : vector<8x48xf32>
    %175 = arith.addf %170, %174 : vector<8x48xf32>
    %176 = arith.mulf %163, %166 : vector<8x6xf32>
    %cst_73 = arith.constant dense<0.000000e+00> : vector<8x48xf32>
    %177 = tpu.matmul %176, %98, %cst_73 {dimension_numbers = #tpu.dot_dimension_numbers<[1], [0], [0], [1], [0, 0, 1, 1], [], []>} : vector<8x6xf32>, vector<6x48xf32>, vector<8x48xf32> -> vector<8x48xf32>
    %178 = vector.extract_strided_slice %96 {offsets = [16, 0], sizes = [8, 48], strides = [1, 1]} : vector<24x48xf32> to vector<8x48xf32>
    %179 = arith.mulf %177, %178 : vector<8x48xf32>
    %180 = arith.addf %175, %179 : vector<8x48xf32>
    %181 = vector.extract_strided_slice %92 {offsets = [16, 0], sizes = [8, 48], strides = [1, 1]} : vector<24x48xf32> to vector<8x48xf32>
    %182 = vector.extract_strided_slice %94 {offsets = [0, 0], sizes = [8, 48], strides = [1, 1]} : vector<24x48xf32> to vector<8x48xf32>
    %183 = arith.mulf %181, %182 : vector<8x48xf32>
    %cst_74 = arith.constant dense<0.000000e+00> : vector<8x6xf32>
    %184 = tpu.matmul %183, %97, %cst_74 {dimension_numbers = #tpu.dot_dimension_numbers<[1], [0], [0], [1], [0, 0, 1, 1], [], []>} : vector<8x48xf32>, vector<48x6xf32>, vector<8x6xf32> -> vector<8x6xf32>
    %cst_75 = arith.constant 0.353553385 : f32
    %185 = vector.broadcast %cst_75 : f32 to vector<8x6xf32>
    %186 = arith.mulf %184, %185 : vector<8x6xf32>
    %187 = vector.extract_strided_slice %94 {offsets = [8, 0], sizes = [8, 48], strides = [1, 1]} : vector<24x48xf32> to vector<8x48xf32>
    %188 = arith.mulf %181, %187 : vector<8x48xf32>
    %cst_76 = arith.constant dense<0.000000e+00> : vector<8x6xf32>
    %189 = tpu.matmul %188, %97, %cst_76 {dimension_numbers = #tpu.dot_dimension_numbers<[1], [0], [0], [1], [0, 0, 1, 1], [], []>} : vector<8x48xf32>, vector<48x6xf32>, vector<8x6xf32> -> vector<8x6xf32>
    %cst_77 = arith.constant 0.353553385 : f32
    %190 = vector.broadcast %cst_77 : f32 to vector<8x6xf32>
    %191 = arith.mulf %189, %190 : vector<8x6xf32>
    %192 = vector.extract_strided_slice %94 {offsets = [16, 0], sizes = [8, 48], strides = [1, 1]} : vector<24x48xf32> to vector<8x48xf32>
    %193 = arith.mulf %181, %192 : vector<8x48xf32>
    %cst_78 = arith.constant dense<0.000000e+00> : vector<8x6xf32>
    %194 = tpu.matmul %193, %97, %cst_78 {dimension_numbers = #tpu.dot_dimension_numbers<[1], [0], [0], [1], [0, 0, 1, 1], [], []>} : vector<8x48xf32>, vector<48x6xf32>, vector<8x6xf32> -> vector<8x6xf32>
    %cst_79 = arith.constant 0.353553385 : f32
    %195 = vector.broadcast %cst_79 : f32 to vector<8x6xf32>
    %196 = arith.mulf %194, %195 : vector<8x6xf32>
    %197 = arith.maximumf %186, %191 : vector<8x6xf32>
    %198 = arith.maximumf %197, %196 : vector<8x6xf32>
    %199 = arith.subf %186, %198 : vector<8x6xf32>
    %200 = math.exp %199 : vector<8x6xf32>
    %201 = arith.subf %191, %198 : vector<8x6xf32>
    %202 = math.exp %201 : vector<8x6xf32>
    %203 = arith.subf %196, %198 : vector<8x6xf32>
    %204 = math.exp %203 : vector<8x6xf32>
    %205 = arith.addf %200, %202 : vector<8x6xf32>
    %206 = arith.addf %205, %204 : vector<8x6xf32>
    %207 = tpu.reciprocal %206 {approx = true} : vector<8x6xf32> -> vector<8x6xf32>
    %208 = arith.mulf %200, %207 : vector<8x6xf32>
    %cst_80 = arith.constant dense<0.000000e+00> : vector<8x48xf32>
    %209 = tpu.matmul %208, %98, %cst_80 {dimension_numbers = #tpu.dot_dimension_numbers<[1], [0], [0], [1], [0, 0, 1, 1], [], []>} : vector<8x6xf32>, vector<6x48xf32>, vector<8x48xf32> -> vector<8x48xf32>
    %210 = vector.extract_strided_slice %96 {offsets = [0, 0], sizes = [8, 48], strides = [1, 1]} : vector<24x48xf32> to vector<8x48xf32>
    %211 = arith.mulf %209, %210 : vector<8x48xf32>
    %212 = arith.mulf %202, %207 : vector<8x6xf32>
    %cst_81 = arith.constant dense<0.000000e+00> : vector<8x48xf32>
    %213 = tpu.matmul %212, %98, %cst_81 {dimension_numbers = #tpu.dot_dimension_numbers<[1], [0], [0], [1], [0, 0, 1, 1], [], []>} : vector<8x6xf32>, vector<6x48xf32>, vector<8x48xf32> -> vector<8x48xf32>
    %214 = vector.extract_strided_slice %96 {offsets = [8, 0], sizes = [8, 48], strides = [1, 1]} : vector<24x48xf32> to vector<8x48xf32>
    %215 = arith.mulf %213, %214 : vector<8x48xf32>
    %216 = arith.addf %211, %215 : vector<8x48xf32>
    %217 = arith.mulf %204, %207 : vector<8x6xf32>
    %cst_82 = arith.constant dense<0.000000e+00> : vector<8x48xf32>
    %218 = tpu.matmul %217, %98, %cst_82 {dimension_numbers = #tpu.dot_dimension_numbers<[1], [0], [0], [1], [0, 0, 1, 1], [], []>} : vector<8x6xf32>, vector<6x48xf32>, vector<8x48xf32> -> vector<8x48xf32>
    %219 = vector.extract_strided_slice %96 {offsets = [16, 0], sizes = [8, 48], strides = [1, 1]} : vector<24x48xf32> to vector<8x48xf32>
    %220 = arith.mulf %218, %219 : vector<8x48xf32>
    %221 = arith.addf %216, %220 : vector<8x48xf32>
    %222 = tpu.concatenate %139, %180, %221 in 0 : vector<8x48xf32>, vector<8x48xf32>, vector<8x48xf32> -> vector<24x48xf32>
    %223 = arith.addf %222, %89 : vector<24x48xf32>
    %cst_83 = arith.constant dense<0.000000e+00> : vector<24xf32>
    %224 = vector.multi_reduction <add>, %223, %cst_83 [1] : vector<24x48xf32> to vector<24xf32>
    %225 = vector.shape_cast %224 : vector<24xf32> to vector<24x1xf32>
    %cst_84 = arith.constant 4.800000e+01 : f32
    %226 = vector.broadcast %cst_84 : f32 to vector<24x1xf32>
    %227 = arith.divf %225, %226 : vector<24x1xf32>
    %228 = vector.broadcast %227 : vector<24x1xf32> to vector<24x48xf32>
    %229 = arith.subf %223, %228 : vector<24x48xf32>
    %230 = arith.mulf %229, %229 : vector<24x48xf32>
    %cst_85 = arith.constant dense<0.000000e+00> : vector<24xf32>
    %231 = vector.multi_reduction <add>, %230, %cst_85 [1] : vector<24x48xf32> to vector<24xf32>
    %232 = vector.shape_cast %231 : vector<24xf32> to vector<24x1xf32>
    %cst_86 = arith.constant 4.800000e+01 : f32
    %233 = vector.broadcast %cst_86 : f32 to vector<24x1xf32>
    %234 = arith.divf %232, %233 : vector<24x1xf32>
    %cst_87 = arith.constant 9.99999974E-6 : f32
    %235 = vector.broadcast %cst_87 : f32 to vector<24x1xf32>
    %236 = arith.addf %234, %235 : vector<24x1xf32>
    %237 = math.rsqrt %236 : vector<24x1xf32>
    %238 = vector.broadcast %237 : vector<24x1xf32> to vector<24x48xf32>
    %239 = arith.mulf %229, %238 : vector<24x48xf32>
    %240 = vector.broadcast %0 : vector<1x48xf32> to vector<24x48xf32>
    %241 = arith.mulf %239, %240 : vector<24x48xf32>
    %242 = vector.broadcast %1 : vector<1x48xf32> to vector<24x48xf32>
    %243 = arith.addf %241, %242 : vector<24x48xf32>
    %244 = vector.extract_strided_slice %243 {offsets = [0, 0], sizes = [8, 48], strides = [1, 1]} : vector<24x48xf32> to vector<8x48xf32>
    %245 = arith.truncf %244 : vector<8x48xf32> to vector<8x48xbf16>
    %c0_88 = arith.constant 0 : index
    %c0_89 = arith.constant 0 : index
    %246 = vector.load %arg19[%c0_88, %c0_89] : memref<48x128xbf16, #tpu.memory_space<vmem>>, vector<48x128xbf16>
    %cst_90 = arith.constant dense<0.000000e+00> : vector<8x128xf32>
    %247 = tpu.matmul %245, %246, %cst_90 {dimension_numbers = #tpu.dot_dimension_numbers<[1], [0], [0], [1], [0, 0, 1, 1], [], []>} : vector<8x48xbf16>, vector<48x128xbf16>, vector<8x128xf32> -> vector<8x128xf32>
    %248 = vector.extract_strided_slice %243 {offsets = [8, 0], sizes = [8, 48], strides = [1, 1]} : vector<24x48xf32> to vector<8x48xf32>
    %249 = arith.truncf %248 : vector<8x48xf32> to vector<8x48xbf16>
    %c0_91 = arith.constant 0 : index
    %c0_92 = arith.constant 0 : index
    %250 = vector.load %arg20[%c0_91, %c0_92] : memref<48x128xbf16, #tpu.memory_space<vmem>>, vector<48x128xbf16>
    %cst_93 = arith.constant dense<0.000000e+00> : vector<8x128xf32>
    %251 = tpu.matmul %249, %250, %cst_93 {dimension_numbers = #tpu.dot_dimension_numbers<[1], [0], [0], [1], [0, 0, 1, 1], [], []>} : vector<8x48xbf16>, vector<48x128xbf16>, vector<8x128xf32> -> vector<8x128xf32>
    %252 = arith.addf %247, %251 : vector<8x128xf32>
    %253 = vector.extract_strided_slice %243 {offsets = [16, 0], sizes = [8, 48], strides = [1, 1]} : vector<24x48xf32> to vector<8x48xf32>
    %254 = arith.truncf %253 : vector<8x48xf32> to vector<8x48xbf16>
    %c0_94 = arith.constant 0 : index
    %c0_95 = arith.constant 0 : index
    %255 = vector.load %arg21[%c0_94, %c0_95] : memref<48x128xbf16, #tpu.memory_space<vmem>>, vector<48x128xbf16>
    %cst_96 = arith.constant dense<0.000000e+00> : vector<8x128xf32>
    %256 = tpu.matmul %254, %255, %cst_96 {dimension_numbers = #tpu.dot_dimension_numbers<[1], [0], [0], [1], [0, 0, 1, 1], [], []>} : vector<8x48xbf16>, vector<48x128xbf16>, vector<8x128xf32> -> vector<8x128xf32>
    %257 = arith.addf %252, %256 : vector<8x128xf32>
    %c0_97 = arith.constant 0 : index
    %c0_98 = arith.constant 0 : index
    %258 = vector.load %arg22[%c0_97, %c0_98] : memref<1x128xf32, #tpu.memory_space<vmem>>, vector<1x128xf32>
    %259 = vector.broadcast %258 : vector<1x128xf32> to vector<8x128xf32>
    %260 = arith.addf %257, %259 : vector<8x128xf32>
    %c0_99 = arith.constant 0 : index
    %c0_100 = arith.constant 0 : index
    %261 = vector.load %arg23[%c0_99, %c0_100] : memref<8x128xf32, #tpu.memory_space<vmem>>, vector<8x128xf32>
    tpu.vector_store %arg23[%c0_99, %c0_100], %260 {strides = array<i32>} : memref<8x128xf32, #tpu.memory_space<vmem>>, vector<8x128xf32>,
    return
  }
  func.func @transform_0(%arg0: i32) -> (i32, i32) {
    %c0_i32 = arith.constant 0 : i32
    %c0_i32_0 = arith.constant 0 : i32
    return %arg0, %c0_i32 : i32, i32
  }
  func.func @transform_1(%arg0: i32) -> (i32, i32) {
    %c0_i32 = arith.constant 0 : i32
    %c0_i32_0 = arith.constant 0 : i32
    return %arg0, %c0_i32 : i32, i32
  }
  func.func @transform_2(%arg0: i32) -> (i32, i32) {
    %c0_i32 = arith.constant 0 : i32
    %c0_i32_0 = arith.constant 0 : i32
    return %arg0, %c0_i32 : i32, i32
  }
  func.func @transform_3(%arg0: i32) -> (i32, i32) {
    %c0_i32 = arith.constant 0 : i32
    %c0_i32_0 = arith.constant 0 : i32
    %c0_i32_1 = arith.constant 0 : i32
    return %c0_i32, %c0_i32_0 : i32, i32
  }
  func.func @transform_4(%arg0: i32) -> (i32, i32) {
    %c0_i32 = arith.constant 0 : i32
    %c0_i32_0 = arith.constant 0 : i32
    %c0_i32_1 = arith.constant 0 : i32
    return %c0_i32, %c0_i32_0 : i32, i32
  }
  func.func @transform_5(%arg0: i32) -> (i32, i32) {
    %c0_i32 = arith.constant 0 : i32
    %c0_i32_0 = arith.constant 0 : i32
    %c0_i32_1 = arith.constant 0 : i32
    return %c0_i32, %c0_i32_0 : i32, i32
  }
  func.func @transform_6(%arg0: i32) -> (i32, i32) {
    %c0_i32 = arith.constant 0 : i32
    %c0_i32_0 = arith.constant 0 : i32
    %c0_i32_1 = arith.constant 0 : i32
    return %c0_i32, %c0_i32_0 : i32, i32
  }
  func.func @transform_7(%arg0: i32) -> (i32, i32) {
    %c0_i32 = arith.constant 0 : i32
    %c0_i32_0 = arith.constant 0 : i32
    %c0_i32_1 = arith.constant 0 : i32
    return %c0_i32, %c0_i32_0 : i32, i32
  }
  func.func @transform_8(%arg0: i32) -> (i32, i32) {
    %c0_i32 = arith.constant 0 : i32
    %c0_i32_0 = arith.constant 0 : i32
    %c0_i32_1 = arith.constant 0 : i32
    return %c0_i32, %c0_i32_0 : i32, i32
  }
  func.func @transform_9(%arg0: i32) -> (i32, i32) {
    %c0_i32 = arith.constant 0 : i32
    %c0_i32_0 = arith.constant 0 : i32
    %c0_i32_1 = arith.constant 0 : i32
    return %c0_i32, %c0_i32_0 : i32, i32
  }
  func.func @transform_10(%arg0: i32) -> (i32, i32) {
    %c0_i32 = arith.constant 0 : i32
    %c0_i32_0 = arith.constant 0 : i32
    %c0_i32_1 = arith.constant 0 : i32
    return %c0_i32, %c0_i32_0 : i32, i32
  }
  func.func @transform_11(%arg0: i32) -> (i32, i32) {
    %c0_i32 = arith.constant 0 : i32
    %c0_i32_0 = arith.constant 0 : i32
    %c0_i32_1 = arith.constant 0 : i32
    return %c0_i32, %c0_i32_0 : i32, i32
  }
  func.func @transform_12(%arg0: i32) -> (i32, i32) {
    %c0_i32 = arith.constant 0 : i32
    %c0_i32_0 = arith.constant 0 : i32
    %c0_i32_1 = arith.constant 0 : i32
    return %c0_i32, %c0_i32_0 : i32, i32
  }
  func.func @transform_13(%arg0: i32) -> (i32, i32) {
    %c0_i32 = arith.constant 0 : i32
    %c0_i32_0 = arith.constant 0 : i32
    %c0_i32_1 = arith.constant 0 : i32
    return %c0_i32, %c0_i32_0 : i32, i32
  }
  func.func @transform_14(%arg0: i32) -> (i32, i32) {
    %c0_i32 = arith.constant 0 : i32
    %c0_i32_0 = arith.constant 0 : i32
    %c0_i32_1 = arith.constant 0 : i32
    return %c0_i32, %c0_i32_0 : i32, i32
  }
  func.func @transform_15(%arg0: i32) -> (i32, i32) {
    %c0_i32 = arith.constant 0 : i32
    %c0_i32_0 = arith.constant 0 : i32
    %c0_i32_1 = arith.constant 0 : i32
    return %c0_i32, %c0_i32_0 : i32, i32
  }
  func.func @transform_16(%arg0: i32) -> (i32, i32) {
    %c0_i32 = arith.constant 0 : i32
    %c0_i32_0 = arith.constant 0 : i32
    %c0_i32_1 = arith.constant 0 : i32
    return %c0_i32, %c0_i32_0 : i32, i32
  }
  func.func @transform_17(%arg0: i32) -> (i32, i32) {
    %c0_i32 = arith.constant 0 : i32
    %c0_i32_0 = arith.constant 0 : i32
    %c0_i32_1 = arith.constant 0 : i32
    return %c0_i32, %c0_i32_0 : i32, i32
  }
  func.func @transform_18(%arg0: i32) -> (i32, i32) {
    %c0_i32 = arith.constant 0 : i32
    %c0_i32_0 = arith.constant 0 : i32
    %c0_i32_1 = arith.constant 0 : i32
    return %c0_i32, %c0_i32_0 : i32, i32
  }
  func.func @transform_19(%arg0: i32) -> (i32, i32) {
    %c0_i32 = arith.constant 0 : i32
    %c0_i32_0 = arith.constant 0 : i32
    %c0_i32_1 = arith.constant 0 : i32
    return %c0_i32, %c0_i32_0 : i32, i32
  }
  func.func @transform_20(%arg0: i32) -> (i32, i32) {
    %c0_i32 = arith.constant 0 : i32
    %c0_i32_0 = arith.constant 0 : i32
    %c0_i32_1 = arith.constant 0 : i32
    return %c0_i32, %c0_i32_0 : i32, i32
  }
  func.func @transform_21(%arg0: i32) -> (i32, i32) {
    %c0_i32 = arith.constant 0 : i32
    %c0_i32_0 = arith.constant 0 : i32
    %c0_i32_1 = arith.constant 0 : i32
    return %c0_i32, %c0_i32_0 : i32, i32
  }
  func.func @transform_22(%arg0: i32) -> (i32, i32) {
    %c0_i32 = arith.constant 0 : i32
    %c0_i32_0 = arith.constant 0 : i32
    return %arg0, %c0_i32 : i32, i32
  }
}

</mosaic_0001>

<bundles_post_ra>
// kernel: tpu_custom_call.1
= control target key start
LH: loop header
LB: loop body
LE: loop exit
PB: predicated region body
PF: predicated region fallthrough
CT: control target
= control target key end

     0   :  { %s3907_s0 = inlined_call_operand.hbm [shape: f32[16,32], index: 0, kind: input, shape index: {}]   ;;  %s3908_s1 = inlined_call_operand.hbm [shape: f32[16,24], index: 1, kind: input, shape index: {}]   ;;  %s3909_s2 = inlined_call_operand.hbm [shape: f32[16,16], index: 2, kind: input, shape index: {}]   ;;  %s3910_s3 = inlined_call_operand.hbm [shape: bf16[32,48], index: 3, kind: input, shape index: {}]   ;;  %s3911_s4 = inlined_call_operand.hbm [shape: f32[1,48], index: 4, kind: input, shape index: {}]   ;;  %s3912_s5 = inlined_call_operand.vmem [shape: bf16[24,48], index: 5, kind: input, shape index: {}]   ;;  %s3913_s6 = inlined_call_operand.vmem [shape: f32[1,48], index: 6, kind: input, shape index: {}]   ;;  %s3914_s7 = inlined_call_operand.hbm [shape: bf16[16,48], index: 7, kind: input, shape index: {}]   ;;  %s3915_s8 = inlined_call_operand.vmem [shape: f32[1,48], index: 8, kind: input, shape index: {}]   ;;  %s3916_s9 = inlined_call_operand.vmem [shape: f32[1,48], index: 9, kind: input, shape index: {}]   ;;  %s3917_s10 = inlined_call_operand.hbm [shape: f32[1,48], index: 10, kind: input, shape index: {}]   ;;  %s3918_s11 = inlined_call_operand.vmem [shape: bf16[48,48], index: 11, kind: input, shape index: {}]   ;;  %s3919_s12 = inlined_call_operand.hbm [shape: f32[1,48], index: 12, kind: input, shape index: {}]   ;;  %s3920_s13 = inlined_call_operand.vmem [shape: bf16[48,48], index: 13, kind: input, shape index: {}]   ;;  %s3921_s14 = inlined_call_operand.hbm [shape: bf16[48,48], index: 14, kind: input, shape index: {}]   ;;  %s3922_s15 = inlined_call_operand.hbm [shape: bf16[48,48], index: 15, kind: input, shape index: {}]   ;;  %s3923_s16 = inlined_call_operand.vmem [shape: f32[48,6], index: 16, kind: input, shape index: {}]   ;;  %s3924_s17 = inlined_call_operand.hbm [shape: f32[6,48], index: 17, kind: input, shape index: {}]   ;;  %s3925_s18 = inlined_call_operand.hbm [shape: bf16[48,128], index: 18, kind: input, shape index: {}]   ;;  %s3926_s19 = inlined_call_operand.hbm [shape: bf16[48,128], index: 19, kind: input, shape index: {}]   ;;  %s3927_s20 = inlined_call_operand.hbm [shape: bf16[48,128], index: 20, kind: input, shape index: {}]   ;;  %s3928_s21 = inlined_call_operand.vmem [shape: f32[1,128], index: 21, kind: input, shape index: {}]   ;;  %s3929_s22 = inlined_call_operand.hbm [shape: f32[16,128], index: 22, kind: output, shape index: {}]  }
   0x1   :  { %3952 = sst [smem:[#allocation41_spill]] %s3907_s0 }
   0x2   :  { %3953 = sst [smem:[#allocation42_spill]] %s3908_s1 }
   0x3   :  { %3954 = sst [smem:[#allocation43_spill]] %s3909_s2 }
   0x4   :  { %3955 = sst [smem:[#allocation44_spill]] %s3910_s3 }
   0x5   :  { %3956 = sst [smem:[#allocation45_spill]] %s3911_s4 }
   0x6   :  { %3957 = sst [smem:[#allocation46_spill]] %s3912_s5 }
   0x7   :  { %3958 = sst [smem:[#allocation47_spill]] %s3913_s6 }
   0x8   :  { %3959 = sst [smem:[#allocation48_spill]] %s3914_s7 }
   0x9   :  { %3960 = sst [smem:[#allocation49_spill]] %s3916_s9 }
   0xa   :  { %3961 = sst [smem:[#allocation50_spill]] %s3918_s11 }
   0xb   :  { %3962 = sst [smem:[#allocation51_spill]] %s3919_s12 }
   0xc   :  { %3963 = sst [smem:[#allocation52_spill]] %s3920_s13 }
   0xd   :  { %3964 = sst [smem:[#allocation53_spill]] %s3922_s15 }
   0xe   :  { %3965 = sst [smem:[#allocation54_spill]] %s3923_s16 }
   0xf   :  { %3966 = sst [smem:[#allocation55_spill]] %s3925_s18 }
  0x10   :  { %3967 = sst [smem:[#allocation56_spill]] %s3928_s21 }
  0x11   :  { %3968 = sst [smem:[#allocation57_spill]] %s3929_s22 }
  0x12   :  { %27 = vsyncpa [#allocation3], 0 }
  0x13   :  { %29 = vsyncpa [#allocation3 + $0x1], 0 }
  0x14   :  { %30 = vsyncpa [#allocation6], 0 }
  0x15   :  { %32 = vsyncpa [#allocation6 + $0x1], 0 }
  0x16   :  { %33 = vsyncpa [#allocation9], 0 }
  0x17   :  { %34 = vsyncpa [#allocation12], 0 }
  0x18   :  { %35 = vsyncpa [#allocation15], 0 }
  0x19   :  { %36 = vsyncpa [#allocation18], 0 }
  0x1a   :  { %37 = vsyncpa [#allocation21], 0 }
  0x1b   :  { %38 = vsyncpa [#allocation24], 0 }
  0x1c   :  { %39 = vsyncpa [#allocation4], 0 }
  0x1d   :  { %41 = vsyncpa [#allocation4 + $0x1], 0  ;;  %s3351_s3 = smov 0   ;;  %s3353_s28 = smov 0  }
  0x1e   :  { %s3355_s29 = smov 0   ;;  %s3357_s30 = smov 0  }
  0x1f LB: > { %3969 = sst [smem:[#allocation35_spill]] %s3208_s3  ;;  %s3375_s5 = sadd.s32 4294967295, %s3220_s30   ;;  %s3220_s30 = sphi %s3357_s30, %s4018_s30   ;;  %s3216_s29 = sphi %s3355_s29, %s4022_s29   ;;  %s3212_s28 = sphi %s3353_s28, %s4021_s28   ;;  %s3208_s3 = sphi %s3351_s3, %s4020_s3  }
  0x20   : > { %3970 = sst [smem:[#allocation36_spill]] %s3220_s30  ;;  %p2286_p0 = scmp.ge.s32.totalorder %s3220_s30, 1 }
  0x21   : > { %s3971_s23 = sld [smem:[#allocation44_spill]]  ;;  %p3950_p1 = scmp.eq.s32.totalorder %s3375_s5, 0 }
  0x22   : > { %p555_p2 = scmp.lt.s32.totalorder %s3220_s30, 3  ;;  %s3222_s6 = smov [#allocation8]  }
  0x23   : > { %s568_s25 = sshll.u32 %s3222_s6, 4  ;;  %s3973_s7 = sld [smem:[#allocation48_spill]]  ;;  %s569_s25 = int_to_ptr.vmem [resolvable:$true] %s568_s25 }
  0x24   : > { %p3380_p3 = pnand %p2286_p0, %p555_p2  ;;  %s3975_s12 = sld [smem:[#allocation51_spill]] }
  0x25   : > { %s3223_s21 = smov [#allocation11]   ;;  %s3936_s16 = smov 64  }
  0x26   : > { %p2543_p4 = pneg %p3380_p3  ;;  %s600_s22 = sshll.u32 %s3223_s21, 4  ;;  %s601_s22 = int_to_ptr.vmem [resolvable:$true] %s600_s22 }
  0x27   : > { %s566_s1 = sshll.u32 %s3971_s23, 4  ;;  %s3938_s9 = smov 4   ;;  %s567_s1 = int_to_ptr.hbm [resolvable:$true] %s566_s1 }
  0x28   : > { %p3392_p6 = pnand %p2543_p4, %p3950_p1  ;;  %s3976_s15 = sld [smem:[#allocation53_spill]] }
  0x29   : > { %s598_s27 = sshll.u32 %s3973_s7, 4  ;;  %s3226_s0 = smov [#allocation14]   ;;  %s599_s27 = int_to_ptr.hbm [resolvable:$true] %s598_s27 }
  0x2a   : > { %s634_s6 = sshll.u32 %s3975_s12, 4  ;;  %s636_s23 = sshll.u32 %s3226_s0, 4  ;;  %s635_s6 = int_to_ptr.hbm [resolvable:$true] %s634_s6  ;;  %s637_s23 = int_to_ptr.vmem [resolvable:$true] %s636_s23 }
  0x2b   : > { %2546 = dma.hbm_to_vmem [thread:$0]  (!%p3392_p6), %s567_s1, 256, %s569_s25, [#allocation9], %s3936_s16, %s3936_s16, %s3938_s9  }
  0x2c   : > { %2552 = dma.hbm_to_vmem [thread:$0]  (!%p3392_p6), %s599_s27, 128, %s601_s22, [#allocation12], %s3936_s16, %s3936_s16, %s3938_s9  }
  0x2d   : > { %2558 = dma.hbm_to_vmem [thread:$0]  (!%p3392_p6), %s635_s6, 16, %s637_s23, [#allocation15]  }
  0x2e   : > { %s662_s21 = sshll.u32 %s3976_s15, 4  ;;  %s3227_s1 = smov [#allocation17]   ;;  %s663_s21 = int_to_ptr.hbm [resolvable:$true] %s662_s21 }
  0x2f   : > { %s664_s22 = sshll.u32 %s3227_s1, 4  ;;  %s3977_s18 = sld [smem:[#allocation55_spill]]  ;;  %s665_s22 = int_to_ptr.vmem [resolvable:$true] %s664_s22 }
  0x30   : > { %2564 = dma.hbm_to_vmem [thread:$0]  (!%p3392_p6), %s663_s21, 384, %s665_s22, [#allocation18], %s3936_s16, %s3936_s16, %s3938_s9  }
  0x31   : > { %s3228_s6 = smov [#allocation20]   ;;  %s2285_s0 = sadd.s32 4294967294, %s3220_s30  }
  0x32   : > { %s693_s2 = sshll.u32 %s3228_s6, 4  ;;  %s3429_s23 = sadd.s32 1, %s3220_s30   ;;  %s694_s2 = int_to_ptr.vmem [resolvable:$true] %s693_s2 }
  0x33   : > { %3978 = sst [smem:[#allocation37_spill]] %s3429_s23  ;;  %s54_s1 = sadd.s32 1, %s3216_s29 }
  0x34   : > { %s51_s25 = ssub.s32 %s3220_s30, %s3429_s23  ;;  %p61_p7 = scmp.ne.s32.totalorder %s3216_s29, %s3212_s28 }
  0x35   : > { %s691_s26 = sshll.u32 %s3977_s18, 4  ;;  %p52_p8 = scmp.eq.s32.totalorder %s51_s25, 0  ;;  %s692_s26 = int_to_ptr.hbm [resolvable:$true] %s691_s26 }
  0x36   : > { %2570 = dma.hbm_to_vmem [thread:$0]  (!%p3392_p6), %s692_s26, 384, %s694_s2, [#allocation21], %s3936_s16, %s3936_s16, %s3938_s9  }
  0x37   : > { %p62_p9 = scmp.eq.s32.totalorder %s3220_s30, 0  ;;  %p67_p10 = scmp.ne.s32.totalorder %s3212_s28, %s3208_s3 }
  0x38   : > { %p542_p11 = scmp.eq.s32.totalorder %s3375_s5, 1  ;;  %p548_p2 = scmp.eq.s32.totalorder %s2285_s0, 1 }
  0x39   : > { %s3441_s21 = scalar_select %p52_p8, %s3216_s29, %s54_s1  }
  0x3a   : > { %p63_p12 = por %p62_p9, %p61_p7  ;;  %p3445_p13 = por %p3950_p1, %p67_p10 }
  0x3b   : > { %3979 = sst [smem:[#allocation38_spill]] %s3441_s21  ;;  %p3449_p0 = por %p542_p11, %p61_p7 }
  0x3c   : > { %p2602_p4 = scmp.lt.s32.totalorder %s3220_s30, 2  ;;  %s3940_s26 = sand.u32 1, %s3216_s29  }
  0x3d   : > { %s3981_s27 = scalar_select %p3449_p0, 1, 0 }
  0x3e   : > { %p3455_p5 = por %p548_p2, %p67_p10  ;;  %s3461_s2 = sshll.u32 %s3940_s26, 3 }
  0x3f   : > { %3982 = sst [smem:[#allocation39_spill]] %s3981_s27  ;;  %s3464_s1 = sshll.u32 %s3220_s30, 3 }
  0x40   : > { %s3983_s6 = scalar_select %p3455_p5, 1, 0 }
  0x41   : > { %p3466_p8 = pnand %p2602_p4, %p63_p12  ;;  %s757_s0 = sand.u32 1, %s3220_s30  }
  0x42   : > { %3984 = sst [smem:[#allocation40_spill]] %s3983_s6  ;;  %s761_s15 = scalar_lea.vmem [#allocation5], %s3461_s2 }
  0x43   : > { %s3986_s7 = sld [smem:[#allocation42_spill]]  ;;  %s769_s18 = sshll.u32 %s761_s15, 4  ;;  %s770_s18 = int_to_ptr.vmem [resolvable:$true] %s769_s18 }
  0x44   : > { %s3987_s6 = sld [smem:[#allocation45_spill]]  ;;  %s3479_s27 = scalar_lea.sflag [#allocation6], %s757_s0 }
  0x45   : > { %p2860_p9 = pneg %p3466_p8 }
  0x49   : > { %s765_s12 = scalar_lea.hbm %s3986_s7, %s3464_s1  ;;  %s2863_s15 = scalar_lea.hbm %s3986_s7, 16 }
  0x4a   : > { %s767_s21 = sshll.u32 %s765_s12, 4  ;;  %s581_s3 = sshll.u32 %s3987_s6, 4  ;;  %s768_s21 = int_to_ptr.hbm [resolvable:$true] %s767_s21  ;;  %s582_s3 = int_to_ptr.hbm [resolvable:$true] %s581_s3 }
  0x4b   : > { %s2856_s13 = sshra.s32 %s768_s21, 4  ;;  %s2857_s13 = int_to_ptr.hbm [resolvable:$true] %s2856_s13 }
  0x4c   : > { %s2858_s11 = scalar_lea.hbm %s2857_s13, 8  ;;  %p2864_p12 = scmp.lt.s32.totalorder %s2857_s13, %s3986_s7 }
  0x4d   : > { %p2859_p7 = scmp.ne.s32.totalorder %s2857_s13, %s2858_s11  ;;  %p2865_p2 = scmp.lt.s32.totalorder %s2863_s15, %s2858_s11 }
  0x4f   : > { %p2861_p10 = pnand %p2860_p9, %p2859_p7  ;;  %p2866_p4 = por %p2865_p2, %p2864_p12 }
  0x51   : > { %p2862_p11 = pneg %p2861_p10 }
  0x53   : > { %p2867_p1 = pnand %p2866_p4, %p2862_p11 }
  0x55   : > { %2870 = shalt.err (!%p2867_p1)
}
  0x56   : > { %2583 = dma.hbm_to_vmem [thread:$0]  (!%p3466_p8), %s768_s21, 128, %s770_s18, %s3479_s27  }
  0x57   : > { %s3229_s23 = smov [#allocation10]   ;;  %s619_s9 = sshll.u32 %s3917_s10, 4  ;;  %s620_s9 = int_to_ptr.hbm [resolvable:$true] %s619_s9 }
  0x58   : > { %s583_s26 = sshll.u32 %s3229_s23, 4  ;;  %s648_s30 = sshll.u32 %s3921_s14, 4  ;;  %s584_s26 = int_to_ptr.vmem [resolvable:$true] %s583_s26  ;;  %s649_s30 = int_to_ptr.hbm [resolvable:$true] %s648_s30 }
  0x59   : > { %2549 = dma.hbm_to_vmem [thread:$0]  (!%p3392_p6), %s582_s3, 16, %s584_s26, [#allocation9]  }
  0x5a   : > { %s3230_s12 = smov [#allocation13]   ;;  %s3231_s18 = smov [#allocation16]  }
  0x5b   : > { %s621_s15 = sshll.u32 %s3230_s12, 4  ;;  %s650_s21 = sshll.u32 %s3231_s18, 4  ;;  %s622_s15 = int_to_ptr.vmem [resolvable:$true] %s621_s15  ;;  %s651_s21 = int_to_ptr.vmem [resolvable:$true] %s650_s21 }
  0x5c   : > { %2555 = dma.hbm_to_vmem [thread:$0]  (!%p3392_p6), %s620_s9, 16, %s622_s15, [#allocation12]  }
  0x5d   : > { %s680_s6 = sshll.u32 %s3924_s17, 4  ;;  %s3988_s3 = smov 4   ;;  %s681_s6 = int_to_ptr.hbm [resolvable:$true] %s680_s6 }
  0x5e   : > { %s3989_s26 = smov 64   ;;  %s705_s13 = sshll.u32 %s3926_s19, 4  ;;  %s706_s13 = int_to_ptr.hbm [resolvable:$true] %s705_s13 }
  0x5f   : > { %2561 = dma.hbm_to_vmem [thread:$0]  (!%p3392_p6), %s649_s30, 384, %s651_s21, [#allocation15], %s3989_s26, %s3989_s26, %s3988_s3  }
  0x60   : > { %s3232_s9 = smov [#allocation19]   ;;  %s3233_s15 = smov [#allocation22]  }
  0x61   : > { %s682_s12 = sshll.u32 %s3232_s9, 4  ;;  %s707_s18 = sshll.u32 %s3233_s15, 4  ;;  %s683_s12 = int_to_ptr.vmem [resolvable:$true] %s682_s12  ;;  %s708_s18 = int_to_ptr.vmem [resolvable:$true] %s707_s18 }
  0x62   : > { %2567 = dma.hbm_to_vmem [thread:$0]  (!%p3392_p6), %s681_s6, 128, %s683_s12, [#allocation18]  }
  0x63   : > { %s719_s30 = sshll.u32 %s3927_s20, 4  ;;  %s3234_s21 = smov [#allocation23]   ;;  %s720_s30 = int_to_ptr.hbm [resolvable:$true] %s719_s30 }
  0x64   : > { %2573 = dma.hbm_to_vmem [thread:$0]  (!%p3392_p6), %s706_s13, 384, %s708_s18, [#allocation21], %s3989_s26, %s3989_s26, %s3988_s3  }
  0x65   : > { %s721_s0 = sshll.u32 %s3234_s21, 4  ;;  %s3990_s9 = sld [smem:[#allocation41_spill]]  ;;  %s722_s0 = int_to_ptr.vmem [resolvable:$true] %s721_s0 }
  0x66   : > { %2576 = dma.hbm_to_vmem [thread:$0]  (!%p3392_p6), %s720_s30, 384, %s722_s0, [#allocation24], %s3989_s26, %s3989_s26, %s3988_s3  }
  0x67   : > { %s742_s16 = scalar_lea.vmem [#allocation2], %s3461_s2  ;;  %s3991_s7 = sand.u32 1, %s3216_s29  }
  0x68   : > { %s750_s23 = sshll.u32 %s742_s16, 4  ;;  %s739_s13 = scalar_lea.sflag [#allocation3], %s3991_s7  ;;  %s751_s23 = int_to_ptr.vmem [resolvable:$true] %s750_s23 }
  0x6b   : > { %s746_s12 = scalar_lea.hbm %s3990_s9, %s3464_s1  ;;  %s3073_s6 = scalar_lea.hbm %s3990_s9, 16 }
  0x6c   : > { %s748_s15 = sshll.u32 %s746_s12, 4  ;;  %s749_s15 = int_to_ptr.hbm [resolvable:$true] %s748_s15 }
  0x6d   : > { %s3066_s18 = sshra.s32 %s749_s15, 4  ;;  %s3067_s18 = int_to_ptr.hbm [resolvable:$true] %s3066_s18 }
  0x6e   : > { %s3068_s21 = scalar_lea.hbm %s3067_s18, 8  ;;  %p3074_p6 = scmp.lt.s32.totalorder %s3067_s18, %s3990_s9 }
  0x6f   : > { %p3069_p1 = scmp.ne.s32.totalorder %s3067_s18, %s3068_s21  ;;  %p3075_p11 = scmp.lt.s32.totalorder %s3073_s6, %s3068_s21 }
  0x71   : > { %p3071_p7 = pnand %p3069_p1, %p2860_p9  ;;  %p3076_p12 = por %p3075_p11, %p3074_p6 }
  0x73   : > { %p3072_p10 = pneg %p3071_p7 }
  0x75   : > { %p3077_p2 = pnand %p3076_p12, %p3072_p10 }
  0x77   : > { %3080 = shalt.err (!%p3077_p2)
}
  0x78   : > { %2580 = dma.hbm_to_vmem [thread:$0]  (!%p3466_p8), %s749_s15, 128, %s751_s23, %s739_s13  }
  0x79   : > { %s3992_s0 = sld [smem:[#allocation43_spill]]  ;;  %s780_s4 = scalar_lea.vmem [#allocation7], %s3461_s2 }
  0x7a   : > { %s788_s11 = sshll.u32 %s780_s4, 4  ;;  %s789_s11 = int_to_ptr.vmem [resolvable:$true] %s788_s11 }
  0x7f   : > { %s784_s12 = scalar_lea.hbm %s3992_s0, %s3464_s1  ;;  %s3103_s15 = scalar_lea.hbm %s3992_s0, 16 }
  0x80   : > { %s786_s16 = sshll.u32 %s784_s12, 4  ;;  %s787_s16 = int_to_ptr.hbm [resolvable:$true] %s786_s16 }
  0x81   : > { %s3096_s18 = sshra.s32 %s787_s16, 4  ;;  %s3097_s18 = int_to_ptr.hbm [resolvable:$true] %s3096_s18 }
  0x82   : > { %s3098_s21 = scalar_lea.hbm %s3097_s18, 8  ;;  %p3104_p10 = scmp.lt.s32.totalorder %s3097_s18, %s3992_s0 }
  0x83   : > { %p3099_p4 = scmp.ne.s32.totalorder %s3097_s18, %s3098_s21  ;;  %p3105_p6 = scmp.lt.s32.totalorder %s3103_s15, %s3098_s21 }
  0x85   : > { %p3101_p1 = pnand %p3099_p4, %p2860_p9  ;;  %p3106_p11 = por %p3105_p6, %p3104_p10 }
  0x87   : > { %p3102_p7 = pneg %p3101_p1 }
  0x89   : > { %p3107_p12 = pnand %p3106_p11, %p3102_p7 }
  0x8b   : > { %3110 = shalt.err (!%p3107_p12)
}
  0x8c   : > { %2586 = dma.hbm_to_vmem [thread:$0]  (!%p3466_p8), %s787_s16, 128, %s789_s11, %s3479_s27  }
  0x8d   : > { %797 = sbr.rel (%p3380_p3) target bundleno = 1914 (0x77a), region = 108  ;;  %s3569_s2 = sand.u32 (!%p3380_p3), 1, %s3212_s28  }
  0x8e   : > { %s3572_s1 = sshll.u32 (!%p3380_p3), %s3569_s2, 3  ;;  %s800_s26 = scalar_lea.sflag (!%p3380_p3), [#allocation3], %s3569_s2 }
  0x8f   : > { %s803_s7 = scalar_lea.vmem (!%p3380_p3), [#allocation2], %s3572_s1 }
  0x92   : > { %3171 = dma.done.wait (%p3445_p13), %s800_s26, 128  }
  0x93   : > { %3173 = vsyncadd (%p3445_p13), %s800_s26, 4294967168  ;;  %s809_s24 = sand.u32 1, %s3375_s5   ;;  %s813_s25 = scalar_lea.vmem [#allocation5], %s3572_s1 }
  0x94   : > { %s810_s27 = scalar_lea.sflag [#allocation6], %s809_s24 }
  0x95   : > { %3175 = dma.done.wait (%p3445_p13), %s810_s27, 256  }
  0x96   : > { %3177 = vsyncadd (%p3445_p13), %s810_s27, 4294967040  ;;  %s823_s30 = scalar_lea.vmem [#allocation7], %s3572_s1  ;;  %p3993_p3 = scmp.eq.s32.totalorder %s3375_s5, 0 }
  0x98   : > { %3179 = dma.done.wait (%p3993_p3), [#allocation9], 272   ;;  %p3994_p8 = pmov %p3993_p3 }
  0x99   : > { %p3995_p9 = pmov %p3993_p3 }
  0x9a   : > { %3181 = vsyncadd (%p3994_p8), [#allocation9], 4294967024 }
  0x9b   : > { %3183 = dma.done.wait (%p3995_p9), [#allocation12], 144   ;;  %p3996_p2 = pmov %p3993_p3 }
  0x9d   : > { %3185 = vsyncadd (%p3996_p2), [#allocation12], 4294967152  ;;  %p3997_p4 = pmov %p3996_p2 }
  0x9e   : > { %p3998_p1 = pmov %p3996_p2 }
  0x9f   : > { %3187 = dma.done.wait (%p3997_p4), [#allocation15], 400  }
  0xa0   : > { %3189 = vsyncadd (%p3998_p1), [#allocation15], 4294966896  ;;  %p3999_p13 = pmov %p3998_p1 }
  0xa1   : > { %p4000_p7 = pmov %p3998_p1 }
  0xa2   : > { %3191 = dma.done.wait (%p3999_p13), [#allocation18], 512  }
  0xa3   : > { %3193 = vsyncadd (%p4000_p7), [#allocation18], 4294966784  ;;  %p4001_p10 = pmov %p3998_p1 }
  0xa4   : > { %p4002_p6 = pmov %p3998_p1 }
  0xa5   : > { %3195 = dma.done.wait (%p4001_p10), [#allocation21], 768  }
  0xa6   : > { %3197 = vsyncadd (%p4002_p6), [#allocation21], 4294966528  ;;  %p4003_p11 = pmov %p3998_p1 }
  0xa7   : > { %p4004_p12 = pmov %p3998_p1 }
  0xa8   : > { %3199 = dma.done.wait (%p4003_p11), [#allocation24], 384  }
  0xa9   : > { %3201 = vsyncadd (%p4004_p12), [#allocation24], 4294966912  ;;  %v2467_v0 = vld [vmem:[#allocation8 + $0x8] sm:$0xff]  ;;  %v2469_v1 = vld [vmem:[#allocation11] sm:$0xff]  ;;  %s4005_s16 = sld [smem:[#allocation46_spill]]  ;;  %vm1052_vm0 = vcmask 1043456  }
  0xaa   : > { %v1093_v4 = vld [vmem:[%s823_s30] sm:$0xff]  ;;  %985 = vmatpush.bf16.msra.mxu0 %v2467_v0  ;;  %1118 = vmatpush.bf16.msra.mxu2 %v2469_v1  ;;  %vm1107_vm1 = vcmask 130048   ;;  %v2466_v6 = vld [vmem:[#allocation8] sm:$0xff]  ;;  %vm975_vm2 = vcmask 261120   ;;  %vm1048_vm3 = vcmask 195584   ;;  %vm992_vm4 = vcmask 392192  }
  0xab   : > { %v1094_v5 = vpack.c.bf16 %v1093_v4, %v1093_v4  ;;  %v953_v7 = vld [vmem:[%s803_s7] sm:$0xff]  ;;  %v1030_v12 = vld [vmem:[%s813_s25] sm:$0xff]  ;;  %s4006_s15 = sld [smem:[#allocation47_spill]]  ;;  %v3235_v29 = vmov 48.0   ;;  %vm1437_vm15 = vcmask 1045504   ;;  %s2463_s3 = sshll.u32 %s3375_s5, 3 }
  0xac   : > { %v954_v10 = vpack.c.bf16 %v953_v7, %v953_v7  ;;  %v1031_v13 = vpack.c.bf16 %v1030_v12, %v1030_v12  ;;  %v2661_v14 = vld [vmem:[#allocation10] ss:$0 sm:$0xff]  ;;  %2668 = vrcp.f32 %v3235_v29  ;;  %s4007_s26 = sld [smem:[#allocation50_spill]]  ;;  %s949_s4 = scalar_lea.vmem [#allocation25], %s3572_s1 }
  0xad   : > { %2339 = vmatmul.msk.bf16.vlgmr.msra.gmra.mxu2 %vm1107_vm1, %v1094_v5  ;;  %v2662_v15 = vld [vmem:[%s3915_s8] ss:$0 sm:$0xff]  ;;  %s4008_s12 = sld [smem:[#allocation52_spill]]  ;;  %s2064_s11 = sshll.u32 %s949_s4, 4  ;;  %s2065_s11 = int_to_ptr.vmem [resolvable:$true] %s2064_s11 }
  0xae   : > { %986 = vmatpush.bf16.msra.mxu0 %v2466_v6  ;;  %s4009_s18 = sld [smem:[#allocation49_spill]]  ;;  %s2052_s5 = scalar_lea.sflag [#allocation4], %s3569_s2 }
  0xaf   : > { %v1034_v2 = vld [vmem:[%s4005_s16 + $0x8] sm:$0xf]  ;;  %v2468_v11 = vld [vmem:[%s4005_s16] sm:$0xff]  ;;  %s4010_s7 = sld [smem:[#allocation54_spill]] }
  0xb0   : > { %v1044_v3 = vunpack.c.l.b16 %v1034_v2  ;;  %s4011_s13 = sld [smem:[#allocation57_spill]] }
  0xb1   : > { %2329 = vmatmul.msk.bf16.vlgmr.msra.gmra.mxu0 %vm975_vm2, %v954_v10  ;;  %v2663_v18 = vld [vmem:[%s4006_s15] ss:$0 sm:$0xff]  ;;  %s4012_s30 = sld [smem:[#allocation56_spill]] }
  0xb2   : > { %v1046_v8 = vpack.c.b16 %v1044_v3, %v1044_v3  ;;  %v2669_v30 = vpop.eup %2668  ;;  %v2472_v51 = vld [vmem:[%s4007_s26 + $0x10] sm:$0xff]  ;;  %v2471_v52 = vld [vmem:[%s4007_s26 + $0x8] sm:$0xff]  ;;  %v2470_v55 = vld [vmem:[%s4007_s26] sm:$0xff] }
  0xb3   : > { %v997_v31 = vmul.f32 48.0, %v2669_v30  ;;  %vm1001_vm5 = vweird.f32 %v2669_v30  ;;  %1189 = vmatpush.bf16.msra.mxu3 %v2472_v51 }
  0xb4   : > { %v1054_v9 = vsel %vm1052_vm0, %v1046_v8, 0  ;;  %v2478_v8 = vld [vmem:[#allocation16 + $0x10] sm:$0xff]  ;;  %vm1433_vm0 = vcmask 48128  }
  0xb5   : > { %1062 = vmatpush.bf16.msra.mxu1 %v1054_v9  ;;  %v998_v32 = vsub.f32 1.0, %v997_v31  ;;  %v2475_v9 = vld [vmem:[%s4008_s12 + $0x10] sm:$0xff]  ;;  %1281 = vmatpush.bf16.msrb.mxu0 %v2478_v8 }
  0xb6   : > { %1239 = vmatpush.bf16.msrb.mxu2 %v2475_v9  ;;  %s2062_s24 = scalar_lea.hbm %s4011_s13, %s2463_s3  ;;  %s3146_s23 = scalar_lea.hbm %s4011_s13, 16 }
  0xb7   : > { %v999_v33 = vmul.f32 %v2669_v30, %v998_v32  ;;  %1190 = vmatpush.bf16.msra.mxu3 %v2471_v52 }
  0xb9   : > { %1063 = vmatpush.bf16.msra.mxu1 %v2468_v11  ;;  %v1000_v34 = vadd.f32 %v2669_v30, %v999_v33 }
  0xbb   : > { %v3630_v35 = vsel %vm1001_vm5, %v2669_v30, %v1000_v34  ;;  %1191 = vmatpush.bf16.msra.mxu3 %v2470_v55 }
  0xbc   : > { %2334 = vmatmul.msk.bf16.vlgmr.msra.gmra.mxu1 %vm1048_vm3, %v1031_v13 }
 0x12e   : > { %v988_v16 = vpop.f32.mrf.mxu0 }
 0x12f   : > { %v989_v17 = vadd.f32 %v2661_v14, %v988_v16 }
 0x130   : > { %v1120_v19 = vpop.f32.mrf.mxu2 }
 0x131   : > { %v1121_v20 = vadd.f32 %v2662_v15, %v1120_v19  ;;  %v993_v21 = vsel %vm992_vm4, %v989_v17, 0.0  ;;  %v3660_v15 = vld [vmem:[%s4009_s18] ss:$0 sm:$0xff]  ;;  %s2066_s18 = sshll.u32 %s2062_s24, 4  ;;  %s2067_s18 = int_to_ptr.hbm [resolvable:$true] %s2066_s18 }
 0x132   : > { %994 = vadd.xlane.f32.xlu0 %v993_v21  ;;  %s3140_s21 = sshra.s32 %s2067_s18, 4  ;;  %s3141_s21 = int_to_ptr.hbm [resolvable:$true] %s3140_s21 }
 0x133   : > { %v1124_v24 = vsel %vm992_vm4, %v1121_v20, 0.0  ;;  %s3142_s6 = scalar_lea.hbm %s3141_s21, 8  ;;  %p3147_p2 = scmp.lt.s32.totalorder %s3141_s21, %s4011_s13 }
 0x134   : > { %1125 = vadd.xlane.f32.xlu1 %v1124_v24  ;;  %p3143_p3 = scmp.ne.s32.totalorder %s3141_s21, %s3142_s6  ;;  %p3148_p4 = scmp.lt.s32.totalorder %s3146_s23, %s3142_s6 }
 0x136   : > { %v990_v25 = vpop.f32.mrf.mxu0  ;;  %p3144_p8 = pnand %p3143_p3, %p3449_p0  ;;  %p3149_p1 = por %p3148_p4, %p3147_p2 }
 0x138   : > { %v1122_v27 = vpop.f32.mrf.mxu2  ;;  %p3145_p9 = pneg %p3144_p8 }
 0x139   : > { %v1065_v22 = vpop.f32.mrf.mxu1 }
 0x13a   : > { %v1066_v23 = vadd.f32 %v2663_v18, %v1065_v22  ;;  %v3663_v22 = vld [vmem:[#allocation13] ss:$0 sm:$0xff]  ;;  %p3150_p13 = pnand %p3149_p1, %p3145_p9 }
 0x13c   : > { %v1069_v26 = vsel %vm992_vm4, %v1066_v23, 0.0 }
 0x13d   : > { %1070 = vadd.xlane.f32.xlu0 %v1069_v26 }
 0x141   : > { %v1067_v28 = vpop.f32.mrf.mxu1 }
 0x1a5   : > { %v995_v36 = vpop.xlane.xlu0 %994 }
 0x1a6   : > { %v1003_v37 = vmul.f32 %v3630_v35, %v995_v36  ;;  %v2481_v36 = vld [vmem:[#allocation17 + $0x10] sm:$0xff] }
 0x1a7   : > { %v1126_v41 = vpop.xlane.xlu1 %1125  ;;  %1323 = vmatpush.bf16.msrb.mxu1 %v2481_v36 }
 0x1a8   : > { %v1004_v38 = vsub.f32 %v989_v17, %v1003_v37  ;;  %v1127_v44 = vmul.f32 %v1126_v41, %v3630_v35  ;;  %v2477_v37 = vld [vmem:[#allocation16 + $0x8] sm:$0xff]  ;;  %v2473_v41 = vld [vmem:[%s4008_s12] sm:$0xff] }
 0x1a9   : > { %1282 = vmatpush.bf16.msrb.mxu0 %v2477_v37 }
 0x1aa   : > { %v1005_v39 = vmul.f32 %v1004_v38, %v1004_v38  ;;  %v3636_v47 = vsub.f32 %v1121_v20, %v1127_v44  ;;  %v3687_v44 = vld [vmem:[%s4010_s7 + $0x20] sm:$0xff] }
 0x1ac   : > { %v1006_v40 = vsel %vm992_vm4, %v1005_v39, 0.0  ;;  %v1129_v49 = vmul.f32 %v3636_v47, %v3636_v47  ;;  %v2480_v39 = vld [vmem:[#allocation17 + $0x8] sm:$0xff] }
 0x1ad   : > { %1007 = vadd.xlane.f32.xlu1 %v1006_v40  ;;  %1324 = vmatpush.bf16.msrb.mxu1 %v2480_v39  ;;  %v2476_v40 = vld [vmem:[#allocation16] sm:$0xff] }
 0x1ae   : > { %v1130_v50 = vsel %vm992_vm4, %v1129_v49, 0.0  ;;  %1283 = vmatpush.bf16.msrb.mxu0 %v2476_v40 }
 0x1b0   : > { %v1071_v42 = vpop.xlane.xlu0 %1070 }
 0x1b1   : > { %v1072_v43 = vmul.f32 %v1071_v42, %v3630_v35  ;;  %v2479_v42 = vld [vmem:[#allocation17] sm:$0xff] }
 0x1b2   : > { %1325 = vmatpush.bf16.msrb.mxu1 %v2479_v42 }
 0x1b3   : > { %v1073_v45 = vsub.f32 %v1066_v23, %v1072_v43  ;;  %v3682_v43 = vld [vmem:[%s4010_s7 + $0x28] sm:$0xff] }
 0x1b4   : > { %1357 = vmatpush.msrb.mxu3 %v3682_v43  ;;  %1407 = vmatpush.msra.mxu0 %v3682_v43 }
 0x1b5   : > { %v1074_v46 = vmul.f32 %v1073_v45, %v1073_v45 }
 0x1b6   : > { %1578 = vmatpush.msra.mxu1 %v3682_v43  ;;  %1358 = vmatpush.msrb.mxu3 %v3687_v44 }
 0x1b7   : > { %v1075_v48 = vsel %vm992_vm4, %v1074_v46, 0.0  ;;  %v3695_v46 = vld [vmem:[%s4010_s7 + $0x18] sm:$0xff]  ;;  %1408 = vmatpush.msra.mxu0 %v3687_v44 }
 0x1b8   : > { %1076 = vadd.xlane.f32.xlu2 %v1075_v48  ;;  %1579 = vmatpush.msra.mxu1 %v3687_v44  ;;  %v2666_v48 = vld [vmem:[#allocation14] ss:$0 sm:$0xff] }
 0x1b9   : > { %1359 = vmatpush.msrb.mxu3 %v3695_v46  ;;  %1409 = vmatpush.msra.mxu0 %v3695_v46 }
 0x1ba   : > { %1580 = vmatpush.msra.mxu1 %v3695_v46 }
 0x1c0   : > { %1131 = vadd.xlane.f32.xlu2 %v1130_v50 }
 0x220   : > { %v1008_v53 = vpop.xlane.xlu1 %1007 }
 0x221   : > { %v1009_v54 = vmul.f32 %v1008_v53, %v3630_v35 }
 0x223   : > { %v1010_v56 = vadd.f32 1e-05, %v1009_v54 }
 0x225   : > { %2670 = vrsqrt.f32 %v1010_v56  ;;  %vm1017_vm7 = vweird.f32 %v1010_v56 }
 0x22b   : > { %v1077_v57 = vpop.xlane.xlu2 %1076  ;;  %v2671_v59 = vpop.eup %2670 }
 0x22c   : > { %v1078_v58 = vmul.f32 %v1077_v57, %v3630_v35  ;;  %v1012_v61 = vmul.f32 %v2671_v59, %v1010_v56  ;;  %vm1018_vm6 = vweird.f32 %v2671_v59  ;;  %v3734_v57 = vld [vmem:[%s4010_s7 + $0x8] sm:$0xff] }
 0x22d   : > { %vm1019_vm8 = vmor %vm1017_vm7, %vm1018_vm6 }
 0x22e   : > { %v1079_v60 = vadd.f32 1e-05, %v1078_v58  ;;  %v1013_v62 = vmul.f32 %v2671_v59, %v1012_v61  ;;  %v3743_v58 = vld [vmem:[%s4010_s7] sm:$0xff] }
 0x230   : > { %2672 = vrsqrt.f32 %v1079_v60  ;;  %v1014_v63 = vmul.f32 0.5, %v1013_v62  ;;  %vm1086_vm10 = vweird.f32 %v1079_v60 }
 0x232   : > { %v1015_v2 = vsub.f32 1.5, %v1014_v63 }
 0x233   : > { %v1132_v0 = vpop.xlane.xlu2 %1131 }
 0x234   : > { %v1133_v1 = vmul.f32 %v1132_v0, %v3630_v35  ;;  %v1016_v5 = vmul.f32 %v2671_v59, %v1015_v2 }
 0x236   : > { %v2673_v3 = vpop.eup %2672  ;;  %v1134_v4 = vadd.f32 1e-05, %v1133_v1  ;;  %v1020_v10 = vsel %vm1019_vm8, %v2671_v59, %v1016_v5 }
 0x237   : > { %v1081_v6 = vmul.f32 %v2673_v3, %v1079_v60  ;;  %vm1087_vm9 = vweird.f32 %v2673_v3  ;;  %v1021_v14 = vmul.f32 %v1020_v10, %v1004_v38  ;;  %v2474_v38 = vld [vmem:[%s4008_s12 + $0x8] sm:$0xff] }
 0x238   : > { %2674 = vrsqrt.f32 %v1134_v4  ;;  %vm1088_vm11 = vmor %vm1086_vm10, %vm1087_vm9  ;;  %vm1141_vm13 = vweird.f32 %v1134_v4  ;;  %1240 = vmatpush.bf16.msrb.mxu2 %v2474_v38 }
 0x239   : > { %v1082_v7 = vmul.f32 %v2673_v3, %v1081_v6  ;;  %v1025_v21 = vmul.f32 %v3660_v15, %v1021_v14 }
 0x23b   : > { %v1083_v11 = vmul.f32 0.5, %v1082_v7  ;;  %v1029_v26 = vadd.f32 %v3663_v22, %v1025_v21 }
 0x23c   : > { %1241 = vmatpush.bf16.msrb.mxu2 %v2473_v41 }
 0x23d   : > { %v1084_v12 = vsub.f32 1.5, %v1083_v11 }
 0x23e   : > { %v2675_v13 = vpop.eup %2674 }
 0x23f   : > { %v1085_v16 = vmul.f32 %v2673_v3, %v1084_v12  ;;  %v1136_v17 = vmul.f32 %v2675_v13, %v1134_v4  ;;  %vm1142_vm12 = vweird.f32 %v2675_v13 }
 0x240   : > { %vm1143_vm14 = vmor %vm1141_vm13, %vm1142_vm12  ;;  %1382 = vmatpush.msra.mxu2 %v3682_v43 }
 0x241   : > { %v1089_v18 = vsel %vm1088_vm11, %v2673_v3, %v1085_v16  ;;  %v1137_v19 = vmul.f32 %v2675_v13, %v1136_v17  ;;  %v3779_v17 = vld [vmem:[#allocation19] sm:$0x3f] }
 0x242   : > { %v1090_v20 = vmul.f32 %v1089_v18, %v1073_v45  ;;  %1383 = vmatpush.msra.mxu2 %v3687_v44 }
 0x243   : > { %v1138_v23 = vmul.f32 0.5, %v1137_v19 }
 0x244   : > { %v1091_v24 = vmul.f32 %v3660_v15, %v1090_v20  ;;  %1384 = vmatpush.msra.mxu2 %v3695_v46 }
 0x245   : > { %v1139_v25 = vsub.f32 1.5, %v1138_v23 }
 0x246   : > { %v1092_v27 = vadd.f32 %v3663_v22, %v1091_v24 }
 0x247   : > { %v1140_v28 = vmul.f32 %v2675_v13, %v1139_v25 }
 0x248   : > { %v1148_v29 = vpack.c.bf16 %v1092_v27, %v1029_v26 }
 0x249   : > { %v1144_v30 = vsel %vm1143_vm14, %v2675_v13, %v1140_v28 }
 0x24a   : > { %2352 = vmatmul.msk.bf16.vlgmr.msra.gmra.mxu3 %vm992_vm4, %v1148_v29  ;;  %v1145_v31 = vmul.f32 %v1144_v30, %v3636_v47  ;;  %v3704_v47 = vld [vmem:[%s4010_s7 + $0x10] sm:$0xff] }
 0x24b   : > { %1360 = vmatpush.msrb.mxu3 %v3704_v47  ;;  %1385 = vmatpush.msra.mxu2 %v3704_v47 }
 0x24c   : > { %v1146_v32 = vmul.f32 %v3660_v15, %v1145_v31  ;;  %1410 = vmatpush.msra.mxu0 %v3704_v47  ;;  %1581 = vmatpush.msra.mxu1 %v3704_v47 }
 0x24d   : > { %1361 = vmatpush.msrb.mxu3 %v3734_v57  ;;  %1386 = vmatpush.msra.mxu2 %v3734_v57 }
 0x24e   : > { %v1147_v33 = vadd.f32 %v3663_v22, %v1146_v32  ;;  %1411 = vmatpush.msra.mxu0 %v3734_v57  ;;  %1582 = vmatpush.msra.mxu1 %v3734_v57 }
 0x24f   : > { %1362 = vmatpush.msrb.mxu3 %v3743_v58  ;;  %1387 = vmatpush.msra.mxu2 %v3743_v58 }
 0x250   : > { %v1149_v34 = vpack.c.bf16 %v1147_v33, %v1147_v33  ;;  %1412 = vmatpush.msra.mxu0 %v3743_v58  ;;  %1583 = vmatpush.msra.mxu1 %v3743_v58 }
 0x251   : > { %2399 = vmatpush.msk.msra.mxu3 %vm1437_vm15, %v3779_v17 }
 0x25a   : > { %2353 = vmatmul.msk.bf16.gmra.mxu3 %vm992_vm4, %v1149_v34 }
 0x2cd   : > { %v1193_v45 = vpop.f32.mrf.mxu3 }
 0x2ce   : > { %v3715_v50 = vadd.f32 %v2666_v48, %v1193_v45 }
 0x2d5   : > { %v1195_v49 = vpop.f32.mrf.mxu3 }
 0x2d6   : > { %v3717_v51 = vadd.f32 %v2666_v48, %v1195_v49 }
 0x2d8   : > { %v1202_v52 = vpack.c.bf16 %v3717_v51, %v3715_v50 }
 0x2da   : > { %2366 = vmatmul.msk.bf16.vlgmr.msrb.gmra.mxu2 %vm992_vm4, %v1202_v52  ;;  %2380 = vmatmul.msk.bf16.vlgmr.msrb.gmra.mxu0 %vm992_vm4, %v1202_v52 }
 0x2db   : > { %2394 = vmatmul.msk.bf16.vlgmr.msrb.gmra.mxu1 %vm992_vm4, %v1202_v52  ;;  %1553 = vmatpush.msrb.mxu0 %v3682_v43 }
 0x2dc   : > { %1694 = vmatpush.msrb.mxu1 %v3682_v43  ;;  %2401 = vmatpush.msk.msrb.mxu2 %vm1437_vm15, %v3779_v17 }
 0x2dd   : > { %v1198_v53 = vpop.f32.mrf.mxu3  ;;  %1554 = vmatpush.msrb.mxu0 %v3687_v44 }
 0x2de   : > { %v3724_v54 = vadd.f32 %v2666_v48, %v1198_v53  ;;  %1695 = vmatpush.msrb.mxu1 %v3687_v44 }
 0x2df   : > { %1555 = vmatpush.msrb.mxu0 %v3695_v46 }
 0x2e0   : > { %v1203_v56 = vpack.c.bf16 %v3724_v54, %v3724_v54  ;;  %1696 = vmatpush.msrb.mxu1 %v3695_v46 }
 0x2e1   : > { %1556 = vmatpush.msrb.mxu0 %v3704_v47 }
 0x2e2   : > { %1697 = vmatpush.msrb.mxu1 %v3704_v47 }
 0x2e3   : > { %1557 = vmatpush.msrb.mxu0 %v3734_v57 }
 0x2e4   : > { %1698 = vmatpush.msrb.mxu1 %v3734_v57 }
 0x2e5   : > { %v1200_v55 = vpop.f32.mrf.mxu3  ;;  %1558 = vmatpush.msrb.mxu0 %v3743_v58 }
 0x2e6   : > { %1699 = vmatpush.msrb.mxu1 %v3743_v58 }
 0x2ea   : > { %2367 = vmatmul.msk.bf16.gmra.mxu2 %vm992_vm4, %v1203_v56  ;;  %2381 = vmatmul.msk.bf16.gmra.mxu0 %vm992_vm4, %v1203_v56 }
 0x2eb   : > { %2395 = vmatmul.msk.bf16.gmra.mxu1 %vm992_vm4, %v1203_v56 }
 0x357   : > { %v1285_v59 = vpop.f32.mrf.mxu0 }
 0x358   : > { %v3761_v60 = vpop.f32.mrf.mxu1 }
 0x35d   : > { %v1243_v61 = vpop.f32.mrf.mxu2 }
 0x35e   : > { %v1343_v62 = vmul.f32 %v1285_v59, %v1243_v61 }
 0x35f   : > { %v1287_v63 = vpop.f32.mrf.mxu0 }
 0x360   : > { %v1368_v0 = vmul.f32 %v1287_v63, %v1243_v61  ;;  %v3763_v1 = vpop.f32.mrf.mxu1  ;;  %2396 = vmatmul.msk.f32.vlgmr.msrb.gmra.mxu3 %vm992_vm4, %v1343_v62 }
 0x361   : > { %1528 = vmatpush.msrb.mxu3 %v3682_v43 }
 0x362   : > { %2397 = vmatmul.msk.f32.vlgmr.msra.gmra.mxu2 %vm992_vm4, %v1368_v0 }
 0x363   : > { %2403 = vmatpush.msk.msra.mxu2 %vm1437_vm15, %v3779_v17  ;;  %1529 = vmatpush.msrb.mxu3 %v3687_v44 }
 0x365   : > { %v1245_v2 = vpop.f32.mrf.mxu2  ;;  %1530 = vmatpush.msrb.mxu3 %v3695_v46 }
 0x366   : > { %v3767_v3 = vmul.f32 %v1285_v59, %v1245_v2  ;;  %v1539_v12 = vmul.f32 %v1287_v63, %v1245_v2 }
 0x367   : > { %v1290_v4 = vpop.f32.mrf.mxu0  ;;  %1531 = vmatpush.msrb.mxu3 %v3704_v47 }
 0x368   : > { %v1393_v5 = vmul.f32 %v1290_v4, %v1243_v61  ;;  %v1564_v6 = vmul.f32 %v1290_v4, %v1245_v2  ;;  %v3769_v7 = vpop.f32.mrf.mxu1 }
 0x369   : > { %1532 = vmatpush.msrb.mxu3 %v3734_v57 }
 0x36a   : > { %2398 = vmatmul.msk.f32.vlgmr.msra.gmra.mxu0 %vm992_vm4, %v1393_v5  ;;  %2407 = vmatmul.msk.f32.vlgmr.msra.gmra.mxu1 %vm992_vm4, %v1564_v6 }
 0x36b   : > { %2412 = vmatpush.msk.msra.mxu0 %vm1437_vm15, %v3779_v17  ;;  %2419 = vmatpush.msk.msra.mxu1 %vm1437_vm15, %v3779_v17 }
 0x36c   : > { %1533 = vmatpush.msrb.mxu3 %v3743_v58 }
 0x36d   : > { %v1248_v8 = vpop.f32.mrf.mxu2 }
 0x36e   : > { %v3773_v9 = vmul.f32 %v1287_v63, %v1248_v8  ;;  %v3775_v10 = vmul.f32 %v1290_v4, %v1248_v8  ;;  %v1680_v13 = vmul.f32 %v1285_v59, %v1248_v8 }
 0x36f   : > { %v1292_v11 = vpop.f32.mrf.mxu0 }
 0x370   : > { %v1334_v14 = vpop.f32.mrf.mxu1 }
 0x372   : > { %2406 = vmatmul.msk.f32.vlgmr.msrb.gmra.mxu0 %vm992_vm4, %v1539_v12  ;;  %2414 = vmatmul.msk.f32.vlgmr.msrb.gmra.mxu1 %vm992_vm4, %v1680_v13 }
 0x373   : > { %2417 = vmatpush.msk.msrb.mxu0 %vm1437_vm15, %v3779_v17 }
 0x375   : > { %v1250_v16 = vpop.f32.mrf.mxu2 }
 0x3e3   : > { %v1364_v18 = vpop.f32.mrf.mxu3 }
 0x3e4   : > { %v1367_v20 = vmul.f32 0.35355338, %v1364_v18 }
 0x3e5   : > { %v1389_v19 = vpop.f32.mrf.mxu2 }
 0x3e6   : > { %v1392_v21 = vmul.f32 0.35355338, %v1389_v19 }
 0x3e7   : > { %v1414_v23 = vpop.f32.mrf.mxu0 }
 0x3e8   : > { %v1418_v24 = vmax.f32 %v1367_v20, %v1392_v21  ;;  %v1417_v25 = vmul.f32 0.35355338, %v1414_v23 }
 0x3ea   : > { %v1419_v26 = vmax.f32 %v1418_v24, %v1417_v25 }
 0x3ec   : > { %v1420_v27 = vsub.f32 %v1367_v20, %v1419_v26  ;;  %v1423_v28 = vsub.f32 %v1392_v21, %v1419_v26  ;;  %v1426_v29 = vsub.f32 %v1417_v25, %v1419_v26 }
 0x3ee   : > { %v1421_v30 = vmul.f32 1.442695, %v1420_v27  ;;  %v1424_v31 = vmul.f32 1.442695, %v1423_v28  ;;  %v1427_v32 = vmul.f32 1.442695, %v1426_v29 }
 0x3ef   : > { %v1560_v49 = vpop.f32.mrf.mxu0 }
 0x3f0   : > { %2676 = vpow2.f32 %v1421_v30  ;;  %v1563_v55 = vmul.f32 0.35355338, %v1560_v49 }
 0x3f1   : > { %2678 = vpow2.f32 %v1424_v31 }
 0x3f2   : > { %2680 = vpow2.f32 %v1427_v32 }
 0x3f6   : > { %v2677_v33 = vpop.eup %2676 }
 0x3f7   : > { %v2679_v34 = vpop.eup %2678 }
 0x3f8   : > { %v1429_v36 = vadd.f32 %v2679_v34, %v2677_v33  ;;  %v2681_v37 = vpop.eup %2680 }
 0x3fa   : > { %v1430_v38 = vadd.f32 %v2681_v37, %v1429_v36 }
 0x3fc   : > { %2682 = vrcp.f32 %v1430_v38 }
 0x402   : > { %v2683_v39 = vpop.eup %2682 }
 0x403   : > { %v1432_v40 = vmul.f32 %v2683_v39, %v2677_v33  ;;  %v1462_v41 = vmul.f32 %v2683_v39, %v2679_v34  ;;  %v1488_v42 = vmul.f32 %v2683_v39, %v2681_v37 }
 0x405   : > { %2400 = vmatmul.msk.f32.vlgmr.msra.gmra.mxu3 %vm1433_vm0, %v1432_v40  ;;  %2402 = vmatmul.msk.f32.vlgmr.msrb.gmra.mxu2 %vm1433_vm0, %v1462_v41 }
 0x406   : > { %2408 = vmatpush.msk.msrb.mxu2 %vm1437_vm15, %v3779_v17  ;;  %2410 = vmatpush.msk.msra.mxu3 %vm1437_vm15, %v3779_v17 }
 0x40d   : > { %2404 = vmatmul.msk.f32.vlgmr.msra.gmra.mxu2 %vm1433_vm0, %v1488_v42  ;;  %2405 = vmatmul.msk.f32.vlgmr.msrb.gmra.mxu3 %vm992_vm4, %v3767_v3 }
 0x40e   : > { %1719 = vmatpush.msra.mxu2 %v3682_v43  ;;  %1744 = vmatpush.msrb.mxu3 %v3682_v43 }
 0x410   : > { %1720 = vmatpush.msra.mxu2 %v3687_v44  ;;  %1745 = vmatpush.msrb.mxu3 %v3687_v44 }
 0x412   : > { %1721 = vmatpush.msra.mxu2 %v3695_v46  ;;  %1746 = vmatpush.msrb.mxu3 %v3695_v46  ;;  %v1585_v46 = vpop.f32.mrf.mxu1 }
 0x414   : > { %1722 = vmatpush.msra.mxu2 %v3704_v47  ;;  %1747 = vmatpush.msrb.mxu3 %v3704_v47 }
 0x416   : > { %1723 = vmatpush.msra.mxu2 %v3734_v57  ;;  %1748 = vmatpush.msrb.mxu3 %v3734_v57  ;;  %v1588_v57 = vmul.f32 0.35355338, %v1585_v46 }
 0x418   : > { %1724 = vmatpush.msra.mxu2 %v3743_v58  ;;  %1749 = vmatpush.msrb.mxu3 %v3743_v58 }
 0x41a   : > { %v1701_v32 = vpop.f32.mrf.mxu1 }
 0x41b   : > { %v1704_v37 = vmul.f32 0.35355338, %v1701_v32  ;;  %v2487_v32 = vld [vmem:[#allocation22 + $0x10] sm:$0xff] }
 0x488   : > { %v1458_v43 = vpop.f32.mrf.mxu3  ;;  %v1483_v45 = vpop.f32.mrf.mxu2 }
 0x489   : > { %v1461_v44 = vmul.f32 %v1458_v43, %v3761_v60  ;;  %v1486_v48 = vmul.f32 %v1483_v45, %v3763_v1 }
 0x48b   : > { %v1487_v47 = vadd.f32 %v1486_v48, %v1461_v44 }
 0x490   : > { %v1509_v52 = vpop.f32.mrf.mxu2  ;;  %v1535_v53 = vpop.f32.mrf.mxu3 }
 0x491   : > { %v1512_v56 = vmul.f32 %v1509_v52, %v3769_v7  ;;  %v1538_v59 = vmul.f32 0.35355338, %v1535_v53 }
 0x493   : > { %v1513_v61 = vadd.f32 %v1512_v56, %v1487_v47  ;;  %v1589_v62 = vmax.f32 %v1538_v59, %v1563_v55 }
 0x495   : > { %v1590_v63 = vmax.f32 %v1589_v62, %v1588_v57  ;;  %v1846_v58 = vadd.f32 %v1513_v61, %v3715_v50  ;;  %v2484_v62 = vld [vmem:[#allocation20 + $0x10] sm:$0xff] }
 0x497   : > { %v1591_v0 = vsub.f32 %v1538_v59, %v1590_v63  ;;  %v1594_v2 = vsub.f32 %v1563_v55, %v1590_v63  ;;  %v1597_v3 = vsub.f32 %v1588_v57, %v1590_v63  ;;  %v1849_v4 = vsel %vm992_vm4, %v1846_v58, 0.0  ;;  %v2483_v63 = vld [vmem:[#allocation20 + $0x8] sm:$0xff] }
 0x498   : > { %1850 = vadd.xlane.f32.xlu0 %v1849_v4 }
 0x499   : > { %v1592_v5 = vmul.f32 1.442695, %v1591_v0  ;;  %v1595_v6 = vmul.f32 1.442695, %v1594_v2  ;;  %v1598_v8 = vmul.f32 1.442695, %v1597_v3 }
 0x49b   : > { %2684 = vpow2.f32 %v1592_v5 }
 0x49c   : > { %2686 = vpow2.f32 %v1595_v6 }
 0x49d   : > { %2688 = vpow2.f32 %v1598_v8 }
 0x4a1   : > { %v2685_v11 = vpop.eup %2684 }
 0x4a2   : > { %v2687_v12 = vpop.eup %2686 }
 0x4a3   : > { %v1600_v13 = vadd.f32 %v2687_v12, %v2685_v11  ;;  %v2689_v14 = vpop.eup %2688 }
 0x4a5   : > { %v1601_v16 = vadd.f32 %v2689_v14, %v1600_v13 }
 0x4a7   : > { %2690 = vrcp.f32 %v1601_v16 }
 0x4ad   : > { %v2691_v18 = vpop.eup %2690 }
 0x4ae   : > { %v1603_v50 = vmul.f32 %v2691_v18, %v2685_v11  ;;  %v1628_v19 = vmul.f32 %v2691_v18, %v2687_v12  ;;  %v1654_v20 = vmul.f32 %v2691_v18, %v2689_v14 }
 0x4b0   : > { %2409 = vmatmul.msk.f32.vlgmr.msrb.gmra.mxu2 %vm1433_vm0, %v1603_v50  ;;  %2411 = vmatmul.msk.f32.vlgmr.msra.gmra.mxu3 %vm1433_vm0, %v1628_v19 }
 0x4b1   : > { %2413 = vmatmul.msk.f32.vlgmr.msra.gmra.mxu0 %vm1433_vm0, %v1654_v20  ;;  %2421 = vmatpush.msk.msrb.mxu2 %vm1437_vm15, %v3779_v17 }
 0x4b2   : > { %1995 = vmatpush.bf16.msra.mxu3 %v2484_v62  ;;  %1961 = vmatpush.bf16.msra.mxu0 %v2487_v32 }
 0x4b6   : > { %1996 = vmatpush.bf16.msra.mxu3 %v2483_v63 }
 0x4b8   : > { %2415 = vmatmul.msk.f32.vlgmr.msra.gmra.mxu2 %vm992_vm4, %v3773_v9  ;;  %2416 = vmatmul.msk.f32.vlgmr.msrb.gmra.mxu3 %vm992_vm4, %v3775_v10 }
 0x50b   : > { %v1851_v21 = vpop.xlane.xlu0 %1850 }
 0x50c   : > { %v1858_v23 = vmul.f32 %v1851_v21, %v3630_v35 }
 0x50e   : > { %v3835_v24 = vsub.f32 %v1846_v58, %v1858_v23  ;;  %v2482_v58 = vld [vmem:[#allocation20] sm:$0xff] }
 0x50f   : > { %1997 = vmatpush.bf16.msra.mxu3 %v2482_v58 }
 0x510   : > { %v1864_v25 = vmul.f32 %v3835_v24, %v3835_v24 }
 0x512   : > { %v1867_v26 = vsel %vm992_vm4, %v1864_v25, 0.0 }
 0x513   : > { %1868 = vadd.xlane.f32.xlu0 %v1867_v26 }
 0x52e   : > { %v1675_v27 = vpop.f32.mrf.mxu0 }
 0x52f   : > { %v1678_v10 = vmul.f32 %v1675_v27, %v3769_v7 }
 0x533   : > { %v1624_v28 = vpop.f32.mrf.mxu2  ;;  %v1649_v17 = vpop.f32.mrf.mxu3 }
 0x534   : > { %v1627_v29 = vmul.f32 %v1624_v28, %v3761_v60  ;;  %v1652_v9 = vmul.f32 %v1649_v17, %v3763_v1 }
 0x536   : > { %v1653_v30 = vadd.f32 %v1652_v9, %v1627_v29 }
 0x538   : > { %v1679_v31 = vadd.f32 %v1678_v10, %v1653_v30 }
 0x53a   : > { %v1847_v33 = vadd.f32 %v1679_v31, %v3717_v51 }
 0x53b   : > { %v1726_v34 = vpop.f32.mrf.mxu2  ;;  %v1751_v36 = vpop.f32.mrf.mxu3 }
 0x53c   : > { %v1729_v38 = vmul.f32 0.35355338, %v1726_v34  ;;  %v1852_v39 = vsel %vm992_vm4, %v1847_v33, 0.0  ;;  %v1754_v41 = vmul.f32 0.35355338, %v1751_v36  ;;  %v2485_v34 = vld [vmem:[#allocation22] sm:$0xff] }
 0x53d   : > { %1853 = vadd.xlane.f32.xlu1 %v1852_v39 }
 0x53e   : > { %v1755_v40 = vmax.f32 %v1704_v37, %v1729_v38 }
 0x540   : > { %v1756_v42 = vmax.f32 %v1755_v40, %v1754_v41 }
 0x542   : > { %v1757_v43 = vsub.f32 %v1704_v37, %v1756_v42  ;;  %v1760_v45 = vsub.f32 %v1729_v38, %v1756_v42  ;;  %v1763_v44 = vsub.f32 %v1754_v41, %v1756_v42 }
 0x544   : > { %v1758_v48 = vmul.f32 1.442695, %v1757_v43  ;;  %v1761_v49 = vmul.f32 1.442695, %v1760_v45  ;;  %v1764_v46 = vmul.f32 1.442695, %v1763_v44 }
 0x546   : > { %2692 = vpow2.f32 %v1758_v48 }
 0x547   : > { %2694 = vpow2.f32 %v1761_v49 }
 0x548   : > { %2696 = vpow2.f32 %v1764_v46 }
 0x54c   : > { %v2693_v51 = vpop.eup %2692 }
 0x54d   : > { %v2695_v52 = vpop.eup %2694 }
 0x54e   : > { %v1766_v53 = vadd.f32 %v2695_v52, %v2693_v51  ;;  %v2697_v55 = vpop.eup %2696 }
 0x550   : > { %v1767_v47 = vadd.f32 %v2697_v55, %v1766_v53 }
 0x552   : > { %2698 = vrcp.f32 %v1767_v47 }
 0x558   : > { %v2699_v56 = vpop.eup %2698 }
 0x559   : > { %v1820_v59 = vmul.f32 %v2699_v56, %v2697_v55  ;;  %v1769_v57 = vmul.f32 %v2699_v56, %v2693_v51  ;;  %v1794_v61 = vmul.f32 %v2699_v56, %v2695_v52  ;;  %v2490_v56 = vld [vmem:[#allocation23 + $0x10] sm:$0xff] }
 0x55a   : > { %2036 = vmatpush.bf16.msrb.mxu1 %v2490_v56 }
 0x55b   : > { %2418 = vmatmul.msk.f32.vlgmr.msrb.gmra.mxu0 %vm1433_vm0, %v1769_v57  ;;  %2420 = vmatmul.msk.f32.vlgmr.msra.gmra.mxu1 %vm1433_vm0, %v1794_v61  ;;  %v2488_v57 = vld [vmem:[#allocation23] sm:$0xff] }
 0x55c   : > { %2422 = vmatmul.msk.f32.vlgmr.msrb.gmra.mxu2 %vm1433_vm0, %v1820_v59  ;;  %v2489_v59 = vld [vmem:[#allocation23 + $0x8] sm:$0xff] }
 0x55e   : > { %2037 = vmatpush.bf16.msrb.mxu1 %v2489_v59 }
 0x562   : > { %2038 = vmatpush.bf16.msrb.mxu1 %v2488_v57 }
 0x586   : > { %v1869_v0 = vpop.xlane.xlu0 %1868 }
 0x587   : > { %v1876_v2 = vmul.f32 %v1869_v0, %v3630_v35 }
 0x589   : > { %v1879_v3 = vadd.f32 1e-05, %v1876_v2 }
 0x58b   : > { %2700 = vrsqrt.f32 %v1879_v3  ;;  %vm1888_vm2 = vweird.f32 %v1879_v3 }
 0x591   : > { %v2701_v4 = vpop.eup %2700 }
 0x592   : > { %v1883_v5 = vmul.f32 %v2701_v4, %v1879_v3  ;;  %vm1889_vm1 = vweird.f32 %v2701_v4 }
 0x593   : > { %vm1890_vm3 = vmor %vm1888_vm2, %vm1889_vm1 }
 0x594   : > { %v1884_v6 = vmul.f32 %v2701_v4, %v1883_v5 }
 0x596   : > { %v1885_v8 = vmul.f32 0.5, %v1884_v6 }
 0x598   : > { %v1886_v11 = vsub.f32 1.5, %v1885_v8 }
 0x59a   : > { %v1887_v12 = vmul.f32 %v2701_v4, %v1886_v11 }
 0x59c   : > { %v1891_v13 = vsel %vm1890_vm3, %v2701_v4, %v1887_v12 }
 0x59d   : > { %v1912_v14 = vmul.f32 %v1891_v13, %v3835_v24 }
 0x59f   : > { %v1915_v16 = vmul.f32 %v3660_v15, %v1912_v14 }
 0x5a1   : > { %v1918_v18 = vadd.f32 %v3663_v22, %v1915_v16  ;;  %v2667_v16 = vld [vmem:[%s4012_s30] ss:$0 sm:$0xff] }
 0x5a3   : > { %v1921_v50 = vpack.c.bf16 %v1918_v18, %v1918_v18 }
 0x5a5   : > { %2448 = vmatmul.msk.bf16.vlgmr.msra.gmra.mxu3 %vm992_vm4, %v1921_v50 }
 0x5b0   : > { %v1854_v19 = vpop.xlane.xlu1 %1853 }
 0x5b1   : > { %v1859_v20 = vmul.f32 %v1854_v19, %v3630_v35 }
 0x5b3   : > { %v1862_v21 = vsub.f32 %v1847_v33, %v1859_v20  ;;  %v2486_v33 = vld [vmem:[#allocation22 + $0x8] sm:$0xff] }
 0x5b4   : > { %1962 = vmatpush.bf16.msra.mxu0 %v2486_v33 }
 0x5b5   : > { %v1865_v23 = vmul.f32 %v1862_v21, %v1862_v21 }
 0x5b7   : > { %v1870_v25 = vsel %vm992_vm4, %v1865_v23, 0.0 }
 0x5b8   : > { %1871 = vadd.xlane.f32.xlu1 %v1870_v25  ;;  %1963 = vmatpush.bf16.msra.mxu0 %v2485_v34 }
 0x5d8   : > { %v1790_v26 = vpop.f32.mrf.mxu0  ;;  %v1815_v27 = vpop.f32.mrf.mxu1 }
 0x5d9   : > { %v1793_v28 = vmul.f32 %v1790_v26, %v3761_v60  ;;  %v1818_v24 = vmul.f32 %v1815_v27, %v3763_v1 }
 0x5db   : > { %v1819_v29 = vadd.f32 %v1818_v24, %v1793_v28 }
 0x5df   : > { %v1841_v17 = vpop.f32.mrf.mxu2 }
 0x5e0   : > { %v1844_v9 = vmul.f32 %v1841_v17, %v3769_v7 }
 0x5e2   : > { %v1845_v10 = vadd.f32 %v1844_v9, %v1819_v29 }
 0x5e4   : > { %v1848_v30 = vadd.f32 %v1845_v10, %v3724_v54 }
 0x5e6   : > { %v1855_v31 = vsel %vm992_vm4, %v1848_v30, 0.0 }
 0x5e7   : > { %1856 = vadd.xlane.f32.xlu2 %v1855_v31 }
 0x628   : > { %v1999_v36 = vpop.f32.mrf.mxu3 }
 0x62b   : > { %v1872_v60 = vpop.xlane.xlu1 %1871 }
 0x62c   : > { %v1877_v1 = vmul.f32 %v1872_v60, %v3630_v35 }
 0x62e   : > { %v1880_v37 = vadd.f32 1e-05, %v1877_v1 }
 0x630   : > { %2702 = vrsqrt.f32 %v1880_v37  ;;  %v2001_v38 = vpop.f32.mrf.mxu3  ;;  %vm1898_vm6 = vweird.f32 %v1880_v37 }
 0x636   : > { %v2703_v7 = vpop.eup %2702 }
 0x637   : > { %v1893_v39 = vmul.f32 %v2703_v7, %v1880_v37  ;;  %vm1899_vm5 = vweird.f32 %v2703_v7 }
 0x638   : > { %vm1900_vm7 = vmor %vm1898_vm6, %vm1899_vm5 }
 0x639   : > { %v1894_v40 = vmul.f32 %v2703_v7, %v1893_v39 }
 0x63b   : > { %v1895_v54 = vmul.f32 0.5, %v1894_v40 }
 0x63d   : > { %v1896_v41 = vsub.f32 1.5, %v1895_v54 }
 0x63f   : > { %v1897_v42 = vmul.f32 %v2703_v7, %v1896_v41 }
 0x641   : > { %v1901_v43 = vsel %vm1900_vm7, %v2703_v7, %v1897_v42 }
 0x642   : > { %v1913_v45 = vmul.f32 %v1901_v43, %v1862_v21 }
 0x644   : > { %v1916_v44 = vmul.f32 %v3660_v15, %v1913_v45 }
 0x646   : > { %v1919_v48 = vadd.f32 %v3663_v22, %v1916_v44 }
 0x648   : > { %v1928_v49 = vpack.c.bf16 %v1919_v48, %v1919_v48 }
 0x64a   : > { %2435 = vmatmul.msk.bf16.vlgmr.msra.gmra.mxu0 %vm992_vm4, %v1928_v49 }
 0x65a   : > { %v1857_v46 = vpop.xlane.xlu2 %1856 }
 0x65b   : > { %v1860_v51 = vmul.f32 %v1857_v46, %v3630_v35 }
 0x65d   : > { %v1863_v52 = vsub.f32 %v1848_v30, %v1860_v51 }
 0x65f   : > { %v1866_v53 = vmul.f32 %v1863_v52, %v1863_v52 }
 0x661   : > { %v1873_v55 = vsel %vm992_vm4, %v1866_v53, 0.0 }
 0x662   : > { %1874 = vadd.xlane.f32.xlu2 %v1873_v55 }
 0x6c7   : > { %v1965_v47 = vpop.f32.mrf.mxu0 }
 0x6c8   : > { %v2000_v14 = vadd.f32 %v1999_v36, %v1965_v47 }
 0x6cf   : > { %v1967_v61 = vpop.f32.mrf.mxu0 }
 0x6d5   : > { %v1875_v62 = vpop.xlane.xlu2 %1874 }
 0x6d6   : > { %v1878_v63 = vmul.f32 %v1875_v62, %v3630_v35 }
 0x6d8   : > { %v1881_v58 = vadd.f32 1e-05, %v1878_v63 }
 0x6da   : > { %2704 = vrsqrt.f32 %v1881_v58  ;;  %vm1908_vm9 = vweird.f32 %v1881_v58 }
 0x6e0   : > { %v2705_v0 = vpop.eup %2704 }
 0x6e1   : > { %v1903_v2 = vmul.f32 %v2705_v0, %v1881_v58  ;;  %vm1909_vm8 = vweird.f32 %v2705_v0 }
 0x6e2   : > { %vm1910_vm10 = vmor %vm1908_vm9, %vm1909_vm8 }
 0x6e3   : > { %v1904_v3 = vmul.f32 %v2705_v0, %v1903_v2 }
 0x6e5   : > { %v1905_v4 = vmul.f32 0.5, %v1904_v3 }
 0x6e7   : > { %v1906_v5 = vsub.f32 1.5, %v1905_v4 }
 0x6e9   : > { %v1907_v6 = vmul.f32 %v2705_v0, %v1906_v5 }
 0x6eb   : > { %v1911_v8 = vsel %vm1910_vm10, %v2705_v0, %v1907_v6 }
 0x6ec   : > { %v1914_v11 = vmul.f32 %v1911_v8, %v1863_v52 }
 0x6ee   : > { %v1917_v12 = vmul.f32 %v3660_v15, %v1914_v11 }
 0x6f0   : > { %v1920_v13 = vadd.f32 %v3663_v22, %v1917_v12 }
 0x6f2   : > { %v2003_v35 = vpack.c.bf16 %v1920_v13, %v1920_v13 }
 0x6f4   : > { %2461 = vmatmul.msk.bf16.vlgmr.msrb.gmra.mxu1 %vm992_vm4, %v2003_v35 }
 0x771   : > { %v2040_v18 = vpop.f32.mrf.mxu1 }
 0x772   : > { %v2044_v15 = vadd.f32 %v2040_v18, %v2000_v14 }
 0x774   : > { %v2049_v22 = vadd.f32 %v2667_v16, %v2044_v15 }
 0x776   : > { %2050 = vst [vmem:[%s949_s4] sm:$0xff] %v2049_v22 }
 0x777   : > { %3153 = shalt.err (!%p3150_p13)
}
 0x778   : > { %2541 = dma.vmem_to_hbm [thread:$0]  (%p3449_p0), %s2065_s11, 128, %s2067_s18, %s2052_s5  }
 0x779   : > { %v2042_v50 = vpop.f32.mrf.mxu1 }
 0x77a PF: > { %s4014_s2 = sld [smem:[#allocation35_spill]] }
 0x77b   : > { %s4016_s25 = sld [smem:[#allocation36_spill]] }
 0x780   : > { %s2078_s30 = sand.u32 1, %s4014_s2  }
 0x781   : > { %p4017_p7 = scmp.ge.s32.totalorder %s4016_s25, 2  ;;  %s2079_s4 = scalar_lea.sflag [#allocation4], %s2078_s30 }
 0x783   : > { %p2588_p10 = pnand %p4017_p7, %p3455_p5 }
 0x785   : > { %p2589_p6 = pneg %p2588_p10 }
 0x787   : > { %3203 = dma.done.wait (%p2589_p6), %s2079_s4, 128  }
 0x788   : > { %3205 = vsyncadd (%p2589_p6), %s2079_s4, 4294967168  ;;  %s4018_s30 = sld [smem:[#allocation37_spill]]  ;;  %s4020_s3 = smov %s3212_s28 }
 0x789   : > { %s4019_s21 = sld [smem:[#allocation38_spill]]  ;;  %s4021_s28 = smov %s3216_s29 }
 0x78e   : > { %p44_p11 = scmp.ge.s32.totalorder %s4018_s30, 4  }
 0x78f   : > { %s4022_s29 = smov %s4019_s21 }
 0x790   :  { %46 = sbr.rel (!%p44_p11) target bundleno = 31 (0x1f), region = 221 }
 0x795   :  { %2085 = vsyncpa [#allocation3], 1 }
 0x796   :  { %2087 = vsyncpa [#allocation3 + $0x1], 1 }
 0x797   :  { %2088 = vsyncpa [#allocation6], 1 }
 0x798   :  { %2090 = vsyncpa [#allocation6 + $0x1], 1 }
 0x799   :  { %2091 = vsyncpa [#allocation9], 1 }
 0x79a   :  { %2092 = vsyncpa [#allocation12], 1 }
 0x79b   :  { %2093 = vsyncpa [#allocation15], 1 }
 0x79c   :  { %2094 = vsyncpa [#allocation18], 1 }
 0x79d   :  { %2095 = vsyncpa [#allocation21], 1 }
 0x79e   :  { %2096 = vsyncpa [#allocation24], 1 }
 0x79f   :  { %2097 = vsyncpa [#allocation4], 1 }
 0x7a0   :  { %2099 = vsyncpa [#allocation4 + $0x1], 1 }

</bundles_post_ra>
